<compile_context>
chip_gen: v6e
topology: v6e:2x2x1
jax: 0.10.0
libtpu: 0.0.40
codegen_flags: <defaults>
</compile_context>

<pallas_src>
import functools

import jax
import jax.numpy as jnp
from jax.experimental import pallas as pl
from jax.experimental.pallas import tpu as pltpu

INPUT_DIM = 1440          # 180 * 8 -> sublane-aligned contraction dim, no padding needed
HIDDEN_DIM = 512
OUTPUT_DIM = 512
MAX_TB = 512              # batch tile cap: 2x the MXU M-side, amortizes the ~0.35us grid-step cost
MIN_TB = 16               # bf16 sublane packing


def _semantic_encoder_kernel(x_ref, w1_ref, b1_ref, w2_ref, b2_ref, o_ref,
                             *, approximate_gelu: bool):
    # Fused MLP on one batch tile: linear1 -> GELU -> linear2.
    x = x_ref[...].astype(jnp.bfloat16)                                   # f32->bf16 cast in-kernel
    h = jnp.dot(x, w1_ref[...], preferred_element_type=jnp.float32)       # (TB, 512) f32 acc
    h = h + b1_ref[...]                                                    # bias in f32
    if approximate_gelu:
        # tanh-approx GELU: tanh issues on the EUP slot, leaving the VALU free (v6e/v7x).
        c = jnp.float32(0.7978845608028654)                                # sqrt(2/pi)
        h = 0.5 * h * (1.0 + jnp.tanh(c * (h + 0.044715 * (h * h * h))))
    else:
        # exact erf form == torch nn.GELU() default
        h = 0.5 * h * (1.0 + jax.lax.erf(h * jnp.float32(0.7071067811865476)))
    out = jnp.dot(h.astype(jnp.bfloat16), w2_ref[...],
                  preferred_element_type=jnp.float32)
    out = out + b2_ref[...]
    o_ref[...] = out.astype(o_ref.dtype)


def prepare_kernel_params(params):
    """One-time layout prep: weights (in_dim, out_dim) bf16, biases (1, N) f32. No K padding."""
    w1, b1, w2, b2, _logit_scale = params
    return (w1.astype(jnp.bfloat16),
            b1.reshape(1, HIDDEN_DIM).astype(jnp.float32),
            w2.astype(jnp.bfloat16),
            b2.reshape(1, OUTPUT_DIM).astype(jnp.float32))


def _choose_batch_tile(batch):
    """Pick (tb, b_pad): tiles <= MAX_TB, padding waste < one 16-row group, and an even
    number of >=2 tiles when the batch is large enough (v7x megacore sharding)."""
    n_tiles = max(1, -(-batch // MAX_TB))
    if n_tiles == 1 and batch > 2 * MIN_TB:
        n_tiles = 2
    if n_tiles > 1 and (n_tiles % 2):
        n_tiles += 1
    tb = -(-batch // n_tiles)
    tb = ((tb + MIN_TB - 1) // MIN_TB) * MIN_TB
    b_pad = ((batch + tb - 1) // tb) * tb
    return tb, b_pad


def semantic_encoder(x, kernel_params, *, out_dtype=jnp.float32, approximate_gelu=True):
    """x: (B, 1440) f32 (or bf16) backbone feature -> (B, 512) out_dtype."""
    w1, b1, w2, b2 = kernel_params
    B = x.shape[0]
    tb, b_pad = _choose_batch_tile(B)
    if b_pad != B:
        # Only the batch dim is padded (small row append); no dtype/K re-layout of x.
        x = jnp.pad(x, ((0, b_pad - B), (0, 0)))

    resident = dict(pipeline_mode=pl.Buffered(1))   # fetched once, single-buffered in VMEM

    out = pl.pallas_call(
        functools.partial(_semantic_encoder_kernel, approximate_gelu=approximate_gelu),
        out_shape=jax.ShapeDtypeStruct((b_pad, OUTPUT_DIM), out_dtype),
        grid_spec=pltpu.PrefetchScalarGridSpec(
            num_scalar_prefetch=0,
            grid=(b_pad // tb,),
            in_specs=[
                pl.BlockSpec((tb, INPUT_DIM), lambda i: (i, 0)),                        # x: pipelined
                pl.BlockSpec((INPUT_DIM, HIDDEN_DIM), lambda i: (0, 0), **resident),    # W1: resident
                pl.BlockSpec((1, HIDDEN_DIM), lambda i: (0, 0), **resident),            # b1: resident
                pl.BlockSpec((HIDDEN_DIM, OUTPUT_DIM), lambda i: (0, 0), **resident),   # W2: resident
                pl.BlockSpec((1, OUTPUT_DIM), lambda i: (0, 0), **resident),            # b2: resident
            ],
            out_specs=pl.BlockSpec((tb, OUTPUT_DIM), lambda i: (i, 0)),
        ),
        compiler_params=pltpu.CompilerParams(
            dimension_semantics=("parallel",),   # independent batch tiles -> 2-TC sharding on v7x
            vmem_limit_bytes=32 << 20,           # working set ~14 MiB at tb=512
        ),
    )(x, w1, b1, w2, b2)
    return out[:B]


def init_params(key):
    """Synthetic params in torch layout semantics but stored (in_dim, out_dim):
    weights_init_normal-style small N(0, 0.02) weights, zero biases."""
    k1, k2 = jax.random.split(key, 2)
    w1 = jax.random.normal(k1, (INPUT_DIM, HIDDEN_DIM), jnp.float32) * 0.02
    b1 = jnp.zeros((HIDDEN_DIM,), jnp.float32)
    w2 = jax.random.normal(k2, (HIDDEN_DIM, OUTPUT_DIM), jnp.float32) * 0.02
    b2 = jnp.zeros((OUTPUT_DIM,), jnp.float32)
    # logit_scale exists on the module but is not used in forward().
    logit_scale = jnp.asarray(jnp.log(1.0 / 0.07), jnp.float32)
    return (w1, b1, w2, b2, logit_scale)


def eeg_net_con_forward(x, kernel_params, **kw):
    """EEG_Net_Con.forward minus the unavailable ATMS_Encoder backbone."""
    return semantic_encoder(x, kernel_params, **kw)


def _reference_forward(x, params, approximate_gelu=True):
    """Pure-JAX reference with the same bf16-input / f32-accumulate precision pattern."""
    w1, b1, w2, b2, _ = params
    xb = x.astype(jnp.bfloat16).astype(jnp.float32)
    w1b = w1.astype(jnp.bfloat16).astype(jnp.float32)
    w2b = w2.astype(jnp.bfloat16).astype(jnp.float32)
    h = jax.nn.gelu(xb @ w1b + b1, approximate=approximate_gelu)
    hb = h.astype(jnp.bfloat16).astype(jnp.float32)
    return hb @ w2b + b2


if __name__ == "__main__":
    key = jax.random.PRNGKey(0)
    kx, kp = jax.random.split(key)

    B = 2
    # Backbone output feature (what semantic_encoder sees): (B, 1440)
    x = jax.random.normal(kx, (B, INPUT_DIM), jnp.float32)
    params = init_params(kp)
    kparams = prepare_kernel_params(params)

    out = eeg_net_con_forward(x, kparams)
    out = jax.block_until_ready(out)

    ref = _reference_forward(x, params)
    assert out.shape == (B, OUTPUT_DIM)
    err = float(jnp.max(jnp.abs(out - ref)))
    assert err < 5e-3, err

    print("KERNEL_OK")
</pallas_src>

<mosaic_0001>
module attributes {stable_mosaic.version = 11 : i64} {
  func.func @_semantic_encoder_kernel(%arg0: i32, %arg1: memref<16x1440xf32, #tpu.memory_space<vmem>>, %arg2: memref<1440x512xbf16, #tpu.memory_space<vmem>>, %arg3: memref<1x512xf32, #tpu.memory_space<vmem>>, %arg4: memref<512x512xbf16, #tpu.memory_space<vmem>>, %arg5: memref<1x512xf32, #tpu.memory_space<vmem>>, %arg6: memref<16x512xf32, #tpu.memory_space<vmem>>) attributes {dimension_semantics = [#tpu.dimension_semantics<parallel>], iteration_bounds = array<i64: 1>, scalar_prefetch = 0 : i64, scratch_operands = 0 : i64, tpu.core_type = #tpu.core_type<tc>, window_params = [{transform_indices = @transform_0, window_bounds = array<i64: 16, 1440>}, {pipeline_mode = #tpu.pipeline_mode<synchronous>, transform_indices = @transform_1, window_bounds = array<i64: 1440, 512>}, {pipeline_mode = #tpu.pipeline_mode<synchronous>, transform_indices = @transform_2, window_bounds = array<i64: 1, 512>}, {pipeline_mode = #tpu.pipeline_mode<synchronous>, transform_indices = @transform_3, window_bounds = array<i64: 512, 512>}, {pipeline_mode = #tpu.pipeline_mode<synchronous>, transform_indices = @transform_4, window_bounds = array<i64: 1, 512>}, {transform_indices = @transform_5, window_bounds = array<i64: 16, 512>}]} {
    %c0 = arith.constant 0 : index
    %c0_0 = arith.constant 0 : index
    %0 = vector.load %arg1[%c0, %c0_0] : memref<16x1440xf32, #tpu.memory_space<vmem>>, vector<16x1440xf32>
    %1 = arith.truncf %0 : vector<16x1440xf32> to vector<16x1440xbf16>
    %c0_1 = arith.constant 0 : index
    %c0_2 = arith.constant 0 : index
    %2 = vector.load %arg2[%c0_1, %c0_2] : memref<1440x512xbf16, #tpu.memory_space<vmem>>, vector<1440x512xbf16>
    %cst = arith.constant dense<0.000000e+00> : vector<16x512xf32>
    %3 = tpu.matmul %1, %2, %cst {dimension_numbers = #tpu.dot_dimension_numbers<[1], [0], [0], [1], [0, 0, 1, 1], [], []>} : vector<16x1440xbf16>, vector<1440x512xbf16>, vector<16x512xf32> -> vector<16x512xf32>
    %c0_3 = arith.constant 0 : index
    %c0_4 = arith.constant 0 : index
    %4 = vector.load %arg3[%c0_3, %c0_4] : memref<1x512xf32, #tpu.memory_space<vmem>>, vector<1x512xf32>
    %5 = vector.broadcast %4 : vector<1x512xf32> to vector<16x512xf32>
    %6 = arith.addf %3, %5 : vector<16x512xf32>
    %cst_5 = arith.constant 5.000000e-01 : f32
    %7 = vector.broadcast %cst_5 : f32 to vector<16x512xf32>
    %8 = arith.mulf %7, %6 : vector<16x512xf32>
    %9 = arith.mulf %6, %6 : vector<16x512xf32>
    %10 = arith.mulf %9, %6 : vector<16x512xf32>
    %cst_6 = arith.constant 4.471500e-02 : f32
    %11 = vector.broadcast %cst_6 : f32 to vector<16x512xf32>
    %12 = arith.mulf %11, %10 : vector<16x512xf32>
    %13 = arith.addf %6, %12 : vector<16x512xf32>
    %cst_7 = arith.constant 0.797884583 : f32
    %14 = vector.broadcast %cst_7 : f32 to vector<16x512xf32>
    %15 = arith.mulf %14, %13 : vector<16x512xf32>
    %16 = math.tanh %15 : vector<16x512xf32>
    %cst_8 = arith.constant 1.000000e+00 : f32
    %17 = vector.broadcast %cst_8 : f32 to vector<16x512xf32>
    %18 = arith.addf %17, %16 : vector<16x512xf32>
    %19 = arith.mulf %8, %18 : vector<16x512xf32>
    %20 = arith.truncf %19 : vector<16x512xf32> to vector<16x512xbf16>
    %c0_9 = arith.constant 0 : index
    %c0_10 = arith.constant 0 : index
    %21 = vector.load %arg4[%c0_9, %c0_10] : memref<512x512xbf16, #tpu.memory_space<vmem>>, vector<512x512xbf16>
    %cst_11 = arith.constant dense<0.000000e+00> : vector<16x512xf32>
    %22 = tpu.matmul %20, %21, %cst_11 {dimension_numbers = #tpu.dot_dimension_numbers<[1], [0], [0], [1], [0, 0, 1, 1], [], []>} : vector<16x512xbf16>, vector<512x512xbf16>, vector<16x512xf32> -> vector<16x512xf32>
    %c0_12 = arith.constant 0 : index
    %c0_13 = arith.constant 0 : index
    %23 = vector.load %arg5[%c0_12, %c0_13] : memref<1x512xf32, #tpu.memory_space<vmem>>, vector<1x512xf32>
    %24 = vector.broadcast %23 : vector<1x512xf32> to vector<16x512xf32>
    %25 = arith.addf %22, %24 : vector<16x512xf32>
    %c0_14 = arith.constant 0 : index
    %c0_15 = arith.constant 0 : index
    %26 = vector.load %arg6[%c0_14, %c0_15] : memref<16x512xf32, #tpu.memory_space<vmem>>, vector<16x512xf32>
    tpu.vector_store %arg6[%c0_14, %c0_15], %25 {strides = array<i32>} : memref<16x512xf32, #tpu.memory_space<vmem>>, vector<16x512xf32>,
    return
  }
  func.func @transform_0(%arg0: i32) -> (i32, i32) {
    %c0_i32 = arith.constant 0 : i32
    %c0_i32_0 = arith.constant 0 : i32
    return %arg0, %c0_i32 : i32, i32
  }
  func.func @transform_1(%arg0: i32) -> (i32, i32) {
    %c0_i32 = arith.constant 0 : i32
    %c0_i32_0 = arith.constant 0 : i32
    %c0_i32_1 = arith.constant 0 : i32
    return %c0_i32, %c0_i32_0 : i32, i32
  }
  func.func @transform_2(%arg0: i32) -> (i32, i32) {
    %c0_i32 = arith.constant 0 : i32
    %c0_i32_0 = arith.constant 0 : i32
    %c0_i32_1 = arith.constant 0 : i32
    return %c0_i32, %c0_i32_0 : i32, i32
  }
  func.func @transform_3(%arg0: i32) -> (i32, i32) {
    %c0_i32 = arith.constant 0 : i32
    %c0_i32_0 = arith.constant 0 : i32
    %c0_i32_1 = arith.constant 0 : i32
    return %c0_i32, %c0_i32_0 : i32, i32
  }
  func.func @transform_4(%arg0: i32) -> (i32, i32) {
    %c0_i32 = arith.constant 0 : i32
    %c0_i32_0 = arith.constant 0 : i32
    %c0_i32_1 = arith.constant 0 : i32
    return %c0_i32, %c0_i32_0 : i32, i32
  }
  func.func @transform_5(%arg0: i32) -> (i32, i32) {
    %c0_i32 = arith.constant 0 : i32
    %c0_i32_0 = arith.constant 0 : i32
    return %arg0, %c0_i32 : i32, i32
  }
}

</mosaic_0001>

<bundles_post_ra>
// kernel: tpu_custom_call.1
= control target key start
LH: loop header
LB: loop body
LE: loop exit
PB: predicated region body
PF: predicated region fallthrough
CT: control target
= control target key end

     0   :  { %10 = vsyncpa [#allocation3], 0  ;;  %s5441_s0 = inlined_call_operand.hbm [shape: f32[16,1440], index: 0, kind: input, shape index: {}]   ;;  %s5442_s1 = inlined_call_operand.hbm [shape: bf16[1440,512], index: 1, kind: input, shape index: {}]   ;;  %s5443_s2 = inlined_call_operand.hbm [shape: f32[1,512], index: 2, kind: input, shape index: {}]   ;;  %s5444_s3 = inlined_call_operand.hbm [shape: bf16[512,512], index: 3, kind: input, shape index: {}]   ;;  %s5445_s4 = inlined_call_operand.hbm [shape: f32[1,512], index: 4, kind: input, shape index: {}]   ;;  %s5446_s5 = inlined_call_operand.hbm [shape: f32[16,512], index: 5, kind: output, shape index: {}]  }
   0x1   :  { %11 = vsyncpa [#allocation6], 0 }
   0x2   :  { %12 = vsyncpa [#allocation9], 0 }
   0x3   :  { %13 = vsyncpa [#allocation4], 0  ;;  %s5267_s18 = smov [#allocation5]  }
   0x4   :  { %s31_s19 = sshll.u32 %s5267_s18, 4  ;;  %s32_s19 = int_to_ptr.vmem [resolvable:$true] %s31_s19 }
   0x5   :  { %s5147_s20 = scalar_lea.vmem %s32_s19, 46080  ;;  %p5152_p1 = scmp.lt.s32.totalorder %s32_s19, %s32_s19 }
   0x6   :  { %p5148_p0 = scmp.ne.s32.totalorder %s32_s19, %s5147_s20  ;;  %p5153_p2 = scmp.lt.s32.totalorder %s5147_s20, %s5147_s20 }
   0x8   :  { %p5154_p3 = por %p5153_p2, %p5152_p1 }
   0xa   :  { %p5155_p4 = pnand %p5154_p3, %p5148_p0 }
   0xc   :  { %5158 = shalt.err (!%p5155_p4)
}
   0xd   :  { %s5268_s21 = smov 256   ;;  %s5269_s22 = smov 16  }
   0xe   :  { %37 = dma.hbm_to_vmem [thread:$0]  %s5442_s1, 46080, %s32_s19, [#allocation6], %s5268_s21, %s5268_s21, %s5269_s22  }
   0xf   :  { %s5270_s25 = smov [#allocation8]   ;;  %s5271_s27 = smov [#allocation2]  }
  0x10   :  { %s53_s26 = sshll.u32 %s5270_s25, 4  ;;  %s19_s28 = sshll.u32 %s5271_s27, 4  ;;  %s54_s26 = int_to_ptr.vmem [resolvable:$true] %s53_s26  ;;  %s20_s28 = int_to_ptr.vmem [resolvable:$true] %s19_s28 }
  0x11   :  { %s5167_s29 = scalar_lea.vmem %s54_s26, 16384  ;;  %p5172_p6 = scmp.lt.s32.totalorder %s54_s26, %s54_s26 }
  0x12   :  { %p5168_p5 = scmp.ne.s32.totalorder %s54_s26, %s5167_s29  ;;  %p5173_p7 = scmp.lt.s32.totalorder %s5167_s29, %s5167_s29 }
  0x14   :  { %p5174_p8 = por %p5173_p7, %p5172_p6 }
  0x16   :  { %p5175_p9 = pnand %p5174_p8, %p5168_p5 }
  0x18   :  { %5178 = shalt.err (!%p5175_p9)
}
  0x19   :  { %59 = dma.hbm_to_vmem [thread:$0]  %s5444_s3, 16384, %s54_s26, [#allocation9], %s5268_s21, %s5268_s21, %s5269_s22  }
  0x1a   :  { %s5187_s7 = scalar_lea.vmem %s20_s28, 3072  ;;  %p5192_p11 = scmp.lt.s32.totalorder %s20_s28, %s20_s28 }
  0x1b   :  { %p5188_p10 = scmp.ne.s32.totalorder %s20_s28, %s5187_s7  ;;  %p5193_p12 = scmp.lt.s32.totalorder %s5187_s7, %s5187_s7 }
  0x1d   :  { %p5194_p13 = por %p5193_p12, %p5192_p11 }
  0x1f   :  { %p5195_p0 = pnand %p5194_p13, %p5188_p10 }
  0x21   :  { %5198 = shalt.err (!%p5195_p0)
}
  0x22   :  { %s5272_s1 = smov 1536   ;;  %s5273_s8 = smov 96  }
  0x23   :  { %25 = dma.hbm_to_vmem [thread:$0]  %s5441_s0, 3072, %s20_s28, [#allocation3], %s5272_s1, %s5272_s1, %s5273_s8  }
  0x24   :  { %s5274_s11 = smov [#allocation7]   ;;  %s5275_s13 = smov [#allocation10]  }
  0x25   :  { %s44_s12 = sshll.u32 %s5274_s11, 4  ;;  %s66_s14 = sshll.u32 %s5275_s13, 4  ;;  %s45_s12 = int_to_ptr.vmem [resolvable:$true] %s44_s12  ;;  %s67_s14 = int_to_ptr.vmem [resolvable:$true] %s66_s14 }
  0x26   :  { %s5207_s3 = scalar_lea.vmem %s45_s12, 64  ;;  %p5212_p2 = scmp.lt.s32.totalorder %s45_s12, %s45_s12 }
  0x27   :  { %p5208_p1 = scmp.ne.s32.totalorder %s45_s12, %s5207_s3  ;;  %p5213_p3 = scmp.lt.s32.totalorder %s5207_s3, %s5207_s3 }
  0x29   :  { %p5214_p4 = por %p5213_p3, %p5212_p2 }
  0x2b   :  { %p5215_p5 = pnand %p5214_p4, %p5208_p1 }
  0x2d   :  { %5218 = shalt.err (!%p5215_p5)
}
  0x2e   :  { %47 = dma.hbm_to_vmem [thread:$0]  %s5443_s2, 64, %s45_s12, [#allocation6]  }
  0x2f   :  { %s5227_s17 = scalar_lea.vmem %s67_s14, 64  ;;  %p5232_p7 = scmp.lt.s32.totalorder %s67_s14, %s67_s14 }
  0x30   :  { %p5228_p6 = scmp.ne.s32.totalorder %s67_s14, %s5227_s17  ;;  %p5233_p8 = scmp.lt.s32.totalorder %s5227_s17, %s5227_s17 }
  0x32   :  { %p5234_p9 = por %p5233_p8, %p5232_p7 }
  0x34   :  { %p5235_p10 = pnand %p5234_p9, %p5228_p6 }
  0x36   :  { %5238 = shalt.err (!%p5235_p10)
}
  0x37   :  { %69 = dma.hbm_to_vmem [thread:$0]  %s5445_s4, 64, %s67_s14, [#allocation9]  }
  0x38   :  { %5259 = dma.done.wait [#allocation3], 3072  }
  0x39   :  { %5260 = vsyncadd [#allocation3], 4294964224 }
  0x3a   :  { %5261 = dma.done.wait [#allocation6], 46144  }
  0x3b   :  { %5262 = vsyncadd [#allocation6], 4294921152 }
  0x3c   :  { %5263 = dma.done.wait [#allocation9], 16448  }
  0x3d   :  { %5264 = vsyncadd [#allocation9], 4294950848  ;;  %v4391_v0 = vld [vmem:[#allocation5 + $0xe4] ss:$16 sps:$4 sm:$0xff]   ;;  %v4395_v2 = vld [vmem:[#allocation5 + $0xe0] ss:$16 sps:$4 sm:$0xff]  }
  0x3e   :  { %v4393_v1 = vld [vmem:[#allocation5 + $0x2e4] ss:$16 sps:$4 sm:$0xff]   ;;  %2308 = vmatprep.subr.bf16.mxu0 %v4391_v0  ;;  %v4396_v3 = vld [vmem:[#allocation5 + $0x2e0] ss:$16 sps:$4 sm:$0xff]   ;;  %v87_v46 = vld [vmem:[#allocation2 + $0x8] sm:$0xff]  ;;  %vm2304_vm0 = vcmask 261120  }
  0x3f   :  { %2351 = vmatprep.subr.bf16.mxu1 %v4393_v1  ;;  %v4397_v4 = vld [vmem:[#allocation5 + $0xc4] ss:$16 sps:$4 sm:$0xff]   ;;  %2309 = vmatpush1.bf16.msra.mxu0 %v4395_v2  ;;  %v4401_v6 = vld [vmem:[#allocation5 + $0xc0] ss:$16 sps:$4 sm:$0xff]   ;;  %v99_v47 = vld [vmem:[#allocation2 + $0x68] sm:$0xff]  ;;  %s5276_s2 = smov [#allocation11]  }
  0x40   :  { %2352 = vmatpush1.bf16.msra.mxu1 %v4396_v3  ;;  %v4399_v5 = vld [vmem:[#allocation5 + $0x2c4] ss:$16 sps:$4 sm:$0xff]   ;;  %2310 = vmatprep.subr.bf16.mxu0 %v4397_v4  ;;  %v4402_v7 = vld [vmem:[#allocation5 + $0x2c0] ss:$16 sps:$4 sm:$0xff]   ;;  %v89_v48 = vld [vmem:[#allocation2 + $0x18] sm:$0xff]  ;;  %v5324_v53 = vpack.c.bf16 %v99_v47, %v87_v46  ;;  %s3875_s4 = sshll.u32 %s5276_s2, 4  ;;  %s3876_s4 = int_to_ptr.vmem [resolvable:$true] %s3875_s4 }
  0x41   :  { %2353 = vmatprep.subr.bf16.mxu1 %v4399_v5  ;;  %v4403_v8 = vld [vmem:[#allocation5 + $0xa4] ss:$16 sps:$4 sm:$0xff]   ;;  %v4407_v10 = vld [vmem:[#allocation5 + $0xa0] ss:$16 sps:$4 sm:$0xff]   ;;  %v101_v49 = vld [vmem:[#allocation2 + $0x78] sm:$0xff]  ;;  %s5239_s19 = scalar_lea.vmem %s3876_s4, 1024  ;;  %p5244_p12 = scmp.lt.s32.totalorder %s3876_s4, %s3876_s4 }
  0x42   :  { %v4405_v9 = vld [vmem:[#allocation5 + $0x2a4] ss:$16 sps:$4 sm:$0xff]   ;;  %v4408_v11 = vld [vmem:[#allocation5 + $0x2a0] ss:$16 sps:$4 sm:$0xff]   ;;  %v5326_v54 = vpack.c.bf16 %v101_v49, %v89_v48  ;;  %2340 = vmatprep.mubr.bf16.mxu0 %v5324_v53  ;;  %v105_v46 = vld [vmem:[#allocation2 + $0x98] sm:$0xff]  ;;  %p5240_p11 = scmp.ne.s32.totalorder %s3876_s4, %s5239_s19  ;;  %p5245_p13 = scmp.lt.s32.totalorder %s5239_s19, %s5239_s19 }
  0x43   :  { %2311 = vmatpush1.bf16.msra.mxu0 %v4401_v6  ;;  %v4409_v12 = vld [vmem:[#allocation5 + $0x84] ss:$16 sps:$4 sm:$0xff]   ;;  %v4413_v14 = vld [vmem:[#allocation5 + $0x80] ss:$16 sps:$4 sm:$0xff]  }
  0x44   :  { %2354 = vmatpush1.bf16.msra.mxu1 %v4402_v7  ;;  %2312 = vmatprep.subr.bf16.mxu0 %v4403_v8  ;;  %v4411_v13 = vld [vmem:[#allocation5 + $0x284] ss:$16 sps:$4 sm:$0xff]   ;;  %v4414_v15 = vld [vmem:[#allocation5 + $0x280] ss:$16 sps:$4 sm:$0xff]   ;;  %p5246_p0 = por %p5245_p13, %p5244_p12 }
  0x45   :  { %2355 = vmatprep.subr.bf16.mxu1 %v4405_v9  ;;  %v4415_v16 = vld [vmem:[#allocation5 + $0x64] ss:$16 sps:$4 sm:$0xff]   ;;  %v4419_v18 = vld [vmem:[#allocation5 + $0x60] ss:$16 sps:$4 sm:$0xff]   ;;  %2383 = vmatprep.mubr.bf16.mxu1 %v5326_v54 }
  0x46   :  { %v4417_v17 = vld [vmem:[#allocation5 + $0x264] ss:$16 sps:$4 sm:$0xff]   ;;  %v4420_v19 = vld [vmem:[#allocation5 + $0x260] ss:$16 sps:$4 sm:$0xff]   ;;  %p5247_p1 = pnand %p5246_p0, %p5240_p11 }
  0x47   :  { %2313 = vmatpush1.bf16.msra.mxu0 %v4407_v10  ;;  %v4421_v20 = vld [vmem:[#allocation5 + $0x44] ss:$16 sps:$4 sm:$0xff]   ;;  %v4425_v22 = vld [vmem:[#allocation5 + $0x40] ss:$16 sps:$4 sm:$0xff]  }
  0x48   :  { %2356 = vmatpush1.bf16.msra.mxu1 %v4408_v11  ;;  %2314 = vmatprep.subr.bf16.mxu0 %v4409_v12  ;;  %v4423_v21 = vld [vmem:[#allocation5 + $0x244] ss:$16 sps:$4 sm:$0xff]   ;;  %v4426_v23 = vld [vmem:[#allocation5 + $0x240] ss:$16 sps:$4 sm:$0xff]  }
  0x49   :  { %2357 = vmatprep.subr.bf16.mxu1 %v4411_v13  ;;  %v4427_v24 = vld [vmem:[#allocation5 + $0x24] ss:$16 sps:$4 sm:$0xff]   ;;  %v4431_v26 = vld [vmem:[#allocation5 + $0x20] ss:$16 sps:$4 sm:$0xff]  }
  0x4a   :  { %v4429_v25 = vld [vmem:[#allocation5 + $0x224] ss:$16 sps:$4 sm:$0xff]   ;;  %v4432_v27 = vld [vmem:[#allocation5 + $0x220] ss:$16 sps:$4 sm:$0xff]  }
  0x4b   :  { %2315 = vmatpush1.bf16.msra.mxu0 %v4413_v14  ;;  %v4433_v28 = vld [vmem:[#allocation5 + $0x4] ss:$16 sps:$4 sm:$0xff]   ;;  %v4437_v30 = vld [vmem:[#allocation5] ss:$16 sps:$4 sm:$0xff]  }
  0x4c   :  { %2358 = vmatpush1.bf16.msra.mxu1 %v4414_v15  ;;  %2316 = vmatprep.subr.bf16.mxu0 %v4415_v16  ;;  %v4435_v29 = vld [vmem:[#allocation5 + $0x204] ss:$16 sps:$4 sm:$0xff]   ;;  %v4438_v31 = vld [vmem:[#allocation5 + $0x200] ss:$16 sps:$4 sm:$0xff]  }
  0x4d   :  { %2359 = vmatprep.subr.bf16.mxu1 %v4417_v17  ;;  %v4439_v32 = vld [vmem:[#allocation5 + $0x1e4] ss:$16 sps:$4 sm:$0xff]   ;;  %v4443_v34 = vld [vmem:[#allocation5 + $0x1e0] ss:$16 sps:$4 sm:$0xff]  }
  0x4e   :  { %v4441_v33 = vld [vmem:[#allocation5 + $0x3e4] ss:$16 sps:$4 sm:$0xff]   ;;  %v4444_v35 = vld [vmem:[#allocation5 + $0x3e0] ss:$16 sps:$4 sm:$0xff]  }
  0x4f   :  { %2317 = vmatpush1.bf16.msra.mxu0 %v4419_v18  ;;  %v4445_v36 = vld [vmem:[#allocation5 + $0x1c4] ss:$16 sps:$4 sm:$0xff]   ;;  %v4449_v38 = vld [vmem:[#allocation5 + $0x1c0] ss:$16 sps:$4 sm:$0xff]  }
  0x50   :  { %2360 = vmatpush1.bf16.msra.mxu1 %v4420_v19  ;;  %2318 = vmatprep.subr.bf16.mxu0 %v4421_v20  ;;  %v4447_v37 = vld [vmem:[#allocation5 + $0x3c4] ss:$16 sps:$4 sm:$0xff]   ;;  %v4450_v39 = vld [vmem:[#allocation5 + $0x3c0] ss:$16 sps:$4 sm:$0xff]  }
  0x51   :  { %2361 = vmatprep.subr.bf16.mxu1 %v4423_v21  ;;  %v4451_v40 = vld [vmem:[#allocation5 + $0x1a4] ss:$16 sps:$4 sm:$0xff]   ;;  %v4455_v42 = vld [vmem:[#allocation5 + $0x1a0] ss:$16 sps:$4 sm:$0xff]  }
  0x52   :  { %v4453_v41 = vld [vmem:[#allocation5 + $0x3a4] ss:$16 sps:$4 sm:$0xff]   ;;  %v4456_v43 = vld [vmem:[#allocation5 + $0x3a0] ss:$16 sps:$4 sm:$0xff]  }
  0x53   :  { %2319 = vmatpush1.bf16.msra.mxu0 %v4425_v22  ;;  %v4457_v44 = vld [vmem:[#allocation5 + $0x184] ss:$16 sps:$4 sm:$0xff]   ;;  %v4461_v50 = vld [vmem:[#allocation5 + $0x180] ss:$16 sps:$4 sm:$0xff]  }
  0x54   :  { %2362 = vmatpush1.bf16.msra.mxu1 %v4426_v23  ;;  %2320 = vmatprep.subr.bf16.mxu0 %v4427_v24  ;;  %v4459_v45 = vld [vmem:[#allocation5 + $0x384] ss:$16 sps:$4 sm:$0xff]   ;;  %v4462_v51 = vld [vmem:[#allocation5 + $0x380] ss:$16 sps:$4 sm:$0xff]  }
  0x55   :  { %2363 = vmatprep.subr.bf16.mxu1 %v4429_v25  ;;  %v4463_v52 = vld [vmem:[#allocation5 + $0x164] ss:$16 sps:$4 sm:$0xff]   ;;  %v4467_v56 = vld [vmem:[#allocation5 + $0x160] ss:$16 sps:$4 sm:$0xff]  }
  0x56   :  { %v4465_v55 = vld [vmem:[#allocation5 + $0x364] ss:$16 sps:$4 sm:$0xff]   ;;  %v4468_v57 = vld [vmem:[#allocation5 + $0x360] ss:$16 sps:$4 sm:$0xff]  }
  0x57   :  { %2321 = vmatpush1.bf16.msra.mxu0 %v4431_v26  ;;  %v4469_v58 = vld [vmem:[#allocation5 + $0x144] ss:$16 sps:$4 sm:$0xff]   ;;  %v4473_v60 = vld [vmem:[#allocation5 + $0x140] ss:$16 sps:$4 sm:$0xff]  }
  0x58   :  { %2364 = vmatpush1.bf16.msra.mxu1 %v4432_v27  ;;  %2322 = vmatprep.subr.bf16.mxu0 %v4433_v28  ;;  %v4471_v59 = vld [vmem:[#allocation5 + $0x344] ss:$16 sps:$4 sm:$0xff]   ;;  %v4474_v61 = vld [vmem:[#allocation5 + $0x340] ss:$16 sps:$4 sm:$0xff]  }
  0x59   :  { %2365 = vmatprep.subr.bf16.mxu1 %v4435_v29  ;;  %v4475_v62 = vld [vmem:[#allocation5 + $0x124] ss:$16 sps:$4 sm:$0xff]   ;;  %v4479_v0 = vld [vmem:[#allocation5 + $0x120] ss:$16 sps:$4 sm:$0xff]  }
  0x5a   :  { %v4477_v63 = vld [vmem:[#allocation5 + $0x324] ss:$16 sps:$4 sm:$0xff]   ;;  %v4480_v1 = vld [vmem:[#allocation5 + $0x320] ss:$16 sps:$4 sm:$0xff]  }
  0x5b   :  { %2323 = vmatpush1.bf16.msra.mxu0 %v4437_v30  ;;  %v4481_v2 = vld [vmem:[#allocation5 + $0x104] ss:$16 sps:$4 sm:$0xff]   ;;  %v4485_v4 = vld [vmem:[#allocation5 + $0x100] ss:$16 sps:$4 sm:$0xff]  }
  0x5c   :  { %2366 = vmatpush1.bf16.msra.mxu1 %v4438_v31  ;;  %2324 = vmatprep.subr.bf16.mxu0 %v4439_v32  ;;  %v4483_v3 = vld [vmem:[#allocation5 + $0x304] ss:$16 sps:$4 sm:$0xff]   ;;  %v4486_v5 = vld [vmem:[#allocation5 + $0x300] ss:$16 sps:$4 sm:$0xff]  }
  0x5d   :  { %2367 = vmatprep.subr.bf16.mxu1 %v4441_v33  ;;  %v86_v6 = vld [vmem:[#allocation2] sm:$0xff]  ;;  %v88_v8 = vld [vmem:[#allocation2 + $0x10] sm:$0xff] }
  0x5e   :  { %v98_v7 = vld [vmem:[#allocation2 + $0x60] sm:$0xff]  ;;  %v100_v9 = vld [vmem:[#allocation2 + $0x70] sm:$0xff] }
  0x5f   :  { %2325 = vmatpush2.bf16.msra.mxu0 %v4443_v34  ;;  %v4489_v10 = vld [vmem:[#allocation5 + $0x4e4] ss:$16 sps:$4 sm:$0xff]   ;;  %v5330_v12 = vpack.c.bf16 %v98_v7, %v86_v6  ;;  %v5332_v13 = vpack.c.bf16 %v100_v9, %v88_v8  ;;  %v4487_v14 = vld [vmem:[#allocation5 + $0x4e0] ss:$16 sps:$4 sm:$0xff]  }
  0x60   :  { %2368 = vmatpush2.bf16.msra.mxu1 %v4444_v35  ;;  %2326 = vmatprep.subr.bf16.mxu0 %v4445_v36  ;;  %v4492_v11 = vld [vmem:[#allocation5 + $0x6e4] ss:$16 sps:$4 sm:$0xff]   ;;  %v4490_v15 = vld [vmem:[#allocation5 + $0x6e0] ss:$16 sps:$4 sm:$0xff]  }
  0x61   :  { %2369 = vmatprep.subr.bf16.mxu1 %v4447_v37  ;;  %v4495_v16 = vld [vmem:[#allocation5 + $0x4c4] ss:$16 sps:$4 sm:$0xff]   ;;  %v4493_v18 = vld [vmem:[#allocation5 + $0x4c0] ss:$16 sps:$4 sm:$0xff]  }
  0x62   :  { %v4498_v17 = vld [vmem:[#allocation5 + $0x6c4] ss:$16 sps:$4 sm:$0xff]   ;;  %v4496_v19 = vld [vmem:[#allocation5 + $0x6c0] ss:$16 sps:$4 sm:$0xff]  }
  0x63   :  { %2327 = vmatpush2.bf16.msra.mxu0 %v4449_v38  ;;  %v4501_v20 = vld [vmem:[#allocation5 + $0x4a4] ss:$16 sps:$4 sm:$0xff]   ;;  %v4499_v22 = vld [vmem:[#allocation5 + $0x4a0] ss:$16 sps:$4 sm:$0xff]  }
  0x64   :  { %2370 = vmatpush2.bf16.msra.mxu1 %v4450_v39  ;;  %2328 = vmatprep.subr.bf16.mxu0 %v4451_v40  ;;  %v4504_v21 = vld [vmem:[#allocation5 + $0x6a4] ss:$16 sps:$4 sm:$0xff]   ;;  %v4502_v23 = vld [vmem:[#allocation5 + $0x6a0] ss:$16 sps:$4 sm:$0xff]   ;;  %v91_v40 = vld [vmem:[#allocation2 + $0x28] sm:$0xff] }
  0x65   :  { %2371 = vmatprep.subr.bf16.mxu1 %v4453_v41  ;;  %v4507_v24 = vld [vmem:[#allocation5 + $0x484] ss:$16 sps:$4 sm:$0xff]   ;;  %v4505_v26 = vld [vmem:[#allocation5 + $0x480] ss:$16 sps:$4 sm:$0xff]   ;;  %v103_v41 = vld [vmem:[#allocation2 + $0x88] sm:$0xff] }
  0x66   :  { %v4510_v25 = vld [vmem:[#allocation5 + $0x684] ss:$16 sps:$4 sm:$0xff]   ;;  %v4508_v27 = vld [vmem:[#allocation5 + $0x680] ss:$16 sps:$4 sm:$0xff]  }
  0x67   :  { %2329 = vmatpush2.bf16.msra.mxu0 %v4455_v42  ;;  %v4513_v28 = vld [vmem:[#allocation5 + $0x464] ss:$16 sps:$4 sm:$0xff]   ;;  %v4511_v30 = vld [vmem:[#allocation5 + $0x460] ss:$16 sps:$4 sm:$0xff]   ;;  %v93_v42 = vld [vmem:[#allocation2 + $0x38] sm:$0xff] }
  0x68   :  { %2372 = vmatpush2.bf16.msra.mxu1 %v4456_v43  ;;  %2330 = vmatprep.subr.bf16.mxu0 %v4457_v44  ;;  %v4516_v29 = vld [vmem:[#allocation5 + $0x664] ss:$16 sps:$4 sm:$0xff]   ;;  %v4514_v31 = vld [vmem:[#allocation5 + $0x660] ss:$16 sps:$4 sm:$0xff]   ;;  %v5338_v47 = vpack.c.bf16 %v105_v46, %v93_v42 }
  0x69   :  { %2373 = vmatprep.subr.bf16.mxu1 %v4459_v45  ;;  %v4519_v32 = vld [vmem:[#allocation5 + $0x444] ss:$16 sps:$4 sm:$0xff]   ;;  %v4517_v34 = vld [vmem:[#allocation5 + $0x440] ss:$16 sps:$4 sm:$0xff]   ;;  %v5336_v45 = vpack.c.bf16 %v103_v41, %v91_v40  ;;  %v95_v41 = vld [vmem:[#allocation2 + $0x48] sm:$0xff] }
  0x6a   :  { %v4522_v33 = vld [vmem:[#allocation5 + $0x644] ss:$16 sps:$4 sm:$0xff]   ;;  %v4520_v35 = vld [vmem:[#allocation5 + $0x640] ss:$16 sps:$4 sm:$0xff]  }
  0x6b   :  { %2331 = vmatpush2.bf16.msra.mxu0 %v4461_v50  ;;  %v4525_v36 = vld [vmem:[#allocation5 + $0x424] ss:$16 sps:$4 sm:$0xff]   ;;  %v4523_v38 = vld [vmem:[#allocation5 + $0x420] ss:$16 sps:$4 sm:$0xff]  }
  0x6c   :  { %2374 = vmatpush2.bf16.msra.mxu1 %v4462_v51  ;;  %2332 = vmatprep.subr.bf16.mxu0 %v4463_v52  ;;  %v4528_v37 = vld [vmem:[#allocation5 + $0x624] ss:$16 sps:$4 sm:$0xff]   ;;  %v4526_v39 = vld [vmem:[#allocation5 + $0x620] ss:$16 sps:$4 sm:$0xff]  }
  0x6d   :  { %2375 = vmatprep.subr.bf16.mxu1 %v4465_v55  ;;  %v4531_v43 = vld [vmem:[#allocation5 + $0x404] ss:$16 sps:$4 sm:$0xff]   ;;  %v4529_v48 = vld [vmem:[#allocation5 + $0x400] ss:$16 sps:$4 sm:$0xff]  }
  0x6e   :  { %v4534_v44 = vld [vmem:[#allocation5 + $0x604] ss:$16 sps:$4 sm:$0xff]   ;;  %v4532_v49 = vld [vmem:[#allocation5 + $0x600] ss:$16 sps:$4 sm:$0xff]  }
  0x6f   :  { %2333 = vmatpush2.bf16.msra.mxu0 %v4467_v56  ;;  %v4537_v50 = vld [vmem:[#allocation5 + $0x5e4] ss:$16 sps:$4 sm:$0xff]   ;;  %v4535_v52 = vld [vmem:[#allocation5 + $0x5e0] ss:$16 sps:$4 sm:$0xff]  }
  0x70   :  { %2376 = vmatpush2.bf16.msra.mxu1 %v4468_v57  ;;  %2334 = vmatprep.subr.bf16.mxu0 %v4469_v58  ;;  %v4540_v51 = vld [vmem:[#allocation5 + $0x7e4] ss:$16 sps:$4 sm:$0xff]   ;;  %v4538_v55 = vld [vmem:[#allocation5 + $0x7e0] ss:$16 sps:$4 sm:$0xff]  }
  0x71   :  { %2377 = vmatprep.subr.bf16.mxu1 %v4471_v59  ;;  %v4543_v56 = vld [vmem:[#allocation5 + $0x5c4] ss:$16 sps:$4 sm:$0xff]   ;;  %v4541_v58 = vld [vmem:[#allocation5 + $0x5c0] ss:$16 sps:$4 sm:$0xff]  }
  0x72   :  { %v4546_v57 = vld [vmem:[#allocation5 + $0x7c4] ss:$16 sps:$4 sm:$0xff]   ;;  %v4544_v59 = vld [vmem:[#allocation5 + $0x7c0] ss:$16 sps:$4 sm:$0xff]  }
  0x73   :  { %2335 = vmatpush2.bf16.msra.mxu0 %v4473_v60  ;;  %v4549_v60 = vld [vmem:[#allocation5 + $0x5a4] ss:$16 sps:$4 sm:$0xff]   ;;  %v4559_v6 = vld [vmem:[#allocation5 + $0x560] ss:$16 sps:$4 sm:$0xff]  }
  0x74   :  { %2378 = vmatpush2.bf16.msra.mxu1 %v4474_v61  ;;  %2336 = vmatprep.subr.bf16.mxu0 %v4475_v62  ;;  %v4552_v61 = vld [vmem:[#allocation5 + $0x7a4] ss:$16 sps:$4 sm:$0xff]   ;;  %v4547_v62 = vld [vmem:[#allocation5 + $0x5a0] ss:$16 sps:$4 sm:$0xff]  }
  0x75   :  { %2379 = vmatprep.subr.bf16.mxu1 %v4477_v63  ;;  %v4550_v63 = vld [vmem:[#allocation5 + $0x7a0] ss:$16 sps:$4 sm:$0xff]   ;;  %v4567_v8 = vld [vmem:[#allocation5 + $0x544] ss:$16 sps:$4 sm:$0xff]  }
  0x76   :  { %v4562_v7 = vld [vmem:[#allocation5 + $0x760] ss:$16 sps:$4 sm:$0xff]   ;;  %v4570_v9 = vld [vmem:[#allocation5 + $0x744] ss:$16 sps:$4 sm:$0xff]  }
  0x77   :  { %2337 = vmatpush2.bf16.msra.mxu0 %v4479_v0  ;;  %v4555_v0 = vld [vmem:[#allocation5 + $0x584] ss:$16 sps:$4 sm:$0xff]   ;;  %v4595_v42 = vld [vmem:[#allocation5 + $0x8a0] ss:$16 sps:$4 sm:$0xff]  }
  0x78   :  { %2380 = vmatpush2.bf16.msra.mxu1 %v4480_v1  ;;  %2338 = vmatprep.subr.bf16.mxu0 %v4481_v2  ;;  %v4558_v1 = vld [vmem:[#allocation5 + $0x784] ss:$16 sps:$4 sm:$0xff]   ;;  %v4553_v2 = vld [vmem:[#allocation5 + $0x580] ss:$16 sps:$4 sm:$0xff]  }
  0x79   :  { %2381 = vmatprep.subr.bf16.mxu1 %v4483_v3  ;;  %v4556_v3 = vld [vmem:[#allocation5 + $0x780] ss:$16 sps:$4 sm:$0xff]   ;;  %v4600_v40 = vld [vmem:[#allocation5 + $0xaa4] ss:$16 sps:$4 sm:$0xff]  }
  0x7a   :  { %v4603_v46 = vld [vmem:[#allocation5 + $0x884] ss:$16 sps:$4 sm:$0xff]  }
  0x7b   :  { %2339 = vmatpush2.bf16.msra.mxu0 %v4485_v4  ;;  %v4561_v4 = vld [vmem:[#allocation5 + $0x564] ss:$16 sps:$4 sm:$0xff]  }
  0x7c   :  { %2382 = vmatpush2.bf16.msra.mxu1 %v4486_v5  ;;  %2394 = vmatprep.subr.bf16.mxu0 %v4489_v10  ;;  %v4564_v5 = vld [vmem:[#allocation5 + $0x764] ss:$16 sps:$4 sm:$0xff]   ;;  %v4565_v10 = vld [vmem:[#allocation5 + $0x540] ss:$16 sps:$4 sm:$0xff]  }
  0x7d   :  { %2437 = vmatprep.subr.bf16.mxu1 %v4492_v11  ;;  %v4568_v11 = vld [vmem:[#allocation5 + $0x740] ss:$16 sps:$4 sm:$0xff]  }
  0x7e   :  { %2341 = vmatmul.mubr.bf16.vlgmr.msra.gmra.mxu0 %v5330_v12 }
  0x7f   :  { %2384 = vmatmul.mubr.bf16.vlgmr.msra.gmra.mxu1 %v5332_v13  ;;  %2395 = vmatpush1.bf16.msra.mxu0 %v4487_v14  ;;  %v4573_v14 = vld [vmem:[#allocation5 + $0x524] ss:$16 sps:$4 sm:$0xff]  }
  0x80   :  { %2438 = vmatpush1.bf16.msra.mxu1 %v4490_v15  ;;  %2396 = vmatprep.subr.bf16.mxu0 %v4495_v16  ;;  %v4576_v15 = vld [vmem:[#allocation5 + $0x724] ss:$16 sps:$4 sm:$0xff]   ;;  %v4571_v16 = vld [vmem:[#allocation5 + $0x520] ss:$16 sps:$4 sm:$0xff]  }
  0x81   :  { %2439 = vmatprep.subr.bf16.mxu1 %v4498_v17  ;;  %2426 = vmatprep.mubr.bf16.mxu0 %v5336_v45  ;;  %v4574_v17 = vld [vmem:[#allocation5 + $0x720] ss:$16 sps:$4 sm:$0xff]  }
  0x82   :  { %2469 = vmatprep.mubr.bf16.mxu1 %v5338_v47 }
  0x83   :  { %2397 = vmatpush1.bf16.msra.mxu0 %v4493_v18  ;;  %v4579_v18 = vld [vmem:[#allocation5 + $0x504] ss:$16 sps:$4 sm:$0xff]  }
  0x84   :  { %2440 = vmatpush1.bf16.msra.mxu1 %v4496_v19  ;;  %2398 = vmatprep.subr.bf16.mxu0 %v4501_v20  ;;  %v4582_v19 = vld [vmem:[#allocation5 + $0x704] ss:$16 sps:$4 sm:$0xff]   ;;  %v4577_v20 = vld [vmem:[#allocation5 + $0x500] ss:$16 sps:$4 sm:$0xff]  }
  0x85   :  { %2441 = vmatprep.subr.bf16.mxu1 %v4504_v21  ;;  %v4580_v21 = vld [vmem:[#allocation5 + $0x700] ss:$16 sps:$4 sm:$0xff]  }
  0x87   :  { %2399 = vmatpush1.bf16.msra.mxu0 %v4499_v22  ;;  %v90_v22 = vld [vmem:[#allocation2 + $0x20] sm:$0xff] }
  0x88   :  { %2442 = vmatpush1.bf16.msra.mxu1 %v4502_v23  ;;  %2400 = vmatprep.subr.bf16.mxu0 %v4507_v24  ;;  %v102_v23 = vld [vmem:[#allocation2 + $0x80] sm:$0xff]  ;;  %v92_v24 = vld [vmem:[#allocation2 + $0x30] sm:$0xff] }
  0x89   :  { %2443 = vmatprep.subr.bf16.mxu1 %v4510_v25  ;;  %v104_v25 = vld [vmem:[#allocation2 + $0x90] sm:$0xff] }
  0x8b   :  { %2401 = vmatpush1.bf16.msra.mxu0 %v4505_v26  ;;  %v4585_v26 = vld [vmem:[#allocation5 + $0x8e4] ss:$16 sps:$4 sm:$0xff]  }
  0x8c   :  { %2444 = vmatpush1.bf16.msra.mxu1 %v4508_v27  ;;  %2402 = vmatprep.subr.bf16.mxu0 %v4513_v28  ;;  %v4588_v27 = vld [vmem:[#allocation5 + $0xae4] ss:$16 sps:$4 sm:$0xff]   ;;  %v4583_v28 = vld [vmem:[#allocation5 + $0x8e0] ss:$16 sps:$4 sm:$0xff]  }
  0x8d   :  { %2445 = vmatprep.subr.bf16.mxu1 %v4516_v29  ;;  %v4586_v29 = vld [vmem:[#allocation5 + $0xae0] ss:$16 sps:$4 sm:$0xff]  }
  0x8f   :  { %2403 = vmatpush1.bf16.msra.mxu0 %v4511_v30  ;;  %v5342_v30 = vpack.c.bf16 %v102_v23, %v90_v22  ;;  %v4646_v22 = vld [vmem:[#allocation5 + $0xe8] ss:$16 sps:$4 sm:$0xff]   ;;  %v4651_v23 = vld [vmem:[#allocation5 + $0x984] ss:$16 sps:$4 sm:$0xff]  }
  0x90   :  { %2446 = vmatpush1.bf16.msra.mxu1 %v4514_v31  ;;  %2404 = vmatprep.subr.bf16.mxu0 %v4519_v32  ;;  %v5344_v31 = vpack.c.bf16 %v104_v25, %v92_v24  ;;  %v97_v32 = vld [vmem:[#allocation2 + $0x58] sm:$0xff]  ;;  %v4649_v25 = vld [vmem:[#allocation5 + $0x980] ss:$16 sps:$4 sm:$0xff]  }
  0x91   :  { %2447 = vmatprep.subr.bf16.mxu1 %v4522_v33  ;;  %v109_v33 = vld [vmem:[#allocation2 + $0xb8] sm:$0xff] }
  0x92   :  { %v4654_v24 = vld [vmem:[#allocation5 + $0xcc] ss:$16 sps:$4 sm:$0xff]  }
  0x93   :  { %2405 = vmatpush1.bf16.msra.mxu0 %v4517_v34  ;;  %v4591_v34 = vld [vmem:[#allocation5 + $0x8c4] ss:$16 sps:$4 sm:$0xff]  }
  0x94   :  { %2448 = vmatpush1.bf16.msra.mxu1 %v4520_v35  ;;  %2406 = vmatprep.subr.bf16.mxu0 %v4525_v36  ;;  %v4594_v35 = vld [vmem:[#allocation5 + $0xac4] ss:$16 sps:$4 sm:$0xff]   ;;  %v5346_v36 = vpack.c.bf16 %v109_v33, %v97_v32  ;;  %v4658_v32 = vld [vmem:[#allocation5 + $0xa8] ss:$16 sps:$4 sm:$0xff]  }
  0x95   :  { %2449 = vmatprep.subr.bf16.mxu1 %v4528_v37  ;;  %v4589_v37 = vld [vmem:[#allocation5 + $0x8c0] ss:$16 sps:$4 sm:$0xff]   ;;  %v4663_v33 = vld [vmem:[#allocation5 + $0x944] ss:$16 sps:$4 sm:$0xff]  }
  0x97   :  { %2407 = vmatpush1.bf16.msra.mxu0 %v4523_v38  ;;  %v4592_v38 = vld [vmem:[#allocation5 + $0xac0] ss:$16 sps:$4 sm:$0xff]  }
  0x98   :  { %2450 = vmatpush1.bf16.msra.mxu1 %v4526_v39  ;;  %2408 = vmatprep.subr.bf16.mxu0 %v4531_v43  ;;  %v4597_v39 = vld [vmem:[#allocation5 + $0x8a4] ss:$16 sps:$4 sm:$0xff]   ;;  %v4598_v43 = vld [vmem:[#allocation5 + $0xaa0] ss:$16 sps:$4 sm:$0xff]  }
  0x99   :  { %2451 = vmatprep.subr.bf16.mxu1 %v4534_v44  ;;  %v107_v44 = vld [vmem:[#allocation2 + $0xa8] sm:$0xff] }
  0x9b   :  { %2409 = vmatpush1.bf16.msra.mxu0 %v4529_v48  ;;  %v5352_v48 = vpack.c.bf16 %v107_v44, %v95_v41  ;;  %v4675_v41 = vld [vmem:[#allocation5 + $0x904] ss:$16 sps:$4 sm:$0xff]   ;;  %v4676_v44 = vld [vmem:[#allocation5 + $0x48] ss:$16 sps:$4 sm:$0xff]  }
  0x9c   :  { %2452 = vmatpush1.bf16.msra.mxu1 %v4532_v49  ;;  %2410 = vmatprep.subr.bf16.mxu0 %v4537_v50  ;;  %v4606_v49 = vld [vmem:[#allocation5 + $0xa84] ss:$16 sps:$4 sm:$0xff]   ;;  %v4601_v50 = vld [vmem:[#allocation5 + $0x880] ss:$16 sps:$4 sm:$0xff]  }
  0x9d   :  { %2453 = vmatprep.subr.bf16.mxu1 %v4540_v51  ;;  %v4604_v51 = vld [vmem:[#allocation5 + $0xa80] ss:$16 sps:$4 sm:$0xff]  }
  0x9f   :  { %2411 = vmatpush2.bf16.msra.mxu0 %v4535_v52  ;;  %v4609_v52 = vld [vmem:[#allocation5 + $0x864] ss:$16 sps:$4 sm:$0xff]  }
  0xa0   :  { %2454 = vmatpush2.bf16.msra.mxu1 %v4538_v55  ;;  %2412 = vmatprep.subr.bf16.mxu0 %v4543_v56  ;;  %v4612_v55 = vld [vmem:[#allocation5 + $0xa64] ss:$16 sps:$4 sm:$0xff]   ;;  %v4607_v56 = vld [vmem:[#allocation5 + $0x860] ss:$16 sps:$4 sm:$0xff]  }
  0xa1   :  { %2455 = vmatprep.subr.bf16.mxu1 %v4546_v57  ;;  %v4610_v57 = vld [vmem:[#allocation5 + $0xa60] ss:$16 sps:$4 sm:$0xff]  }
  0xa3   :  { %2413 = vmatpush2.bf16.msra.mxu0 %v4541_v58  ;;  %v4615_v58 = vld [vmem:[#allocation5 + $0x844] ss:$16 sps:$4 sm:$0xff]  }
  0xa4   :  { %2456 = vmatpush2.bf16.msra.mxu1 %v4544_v59  ;;  %2414 = vmatprep.subr.bf16.mxu0 %v4549_v60  ;;  %v4618_v59 = vld [vmem:[#allocation5 + $0xa44] ss:$16 sps:$4 sm:$0xff]   ;;  %v4613_v60 = vld [vmem:[#allocation5 + $0x840] ss:$16 sps:$4 sm:$0xff]  }
  0xa5   :  { %2457 = vmatprep.subr.bf16.mxu1 %v4552_v61  ;;  %v4616_v61 = vld [vmem:[#allocation5 + $0xa40] ss:$16 sps:$4 sm:$0xff]  }
  0xa7   :  { %2415 = vmatpush2.bf16.msra.mxu0 %v4547_v62  ;;  %v4621_v62 = vld [vmem:[#allocation5 + $0x824] ss:$16 sps:$4 sm:$0xff]  }
  0xa8   :  { %2458 = vmatpush2.bf16.msra.mxu1 %v4550_v63  ;;  %2416 = vmatprep.subr.bf16.mxu0 %v4555_v0  ;;  %v4624_v63 = vld [vmem:[#allocation5 + $0xa24] ss:$16 sps:$4 sm:$0xff]   ;;  %v4619_v0 = vld [vmem:[#allocation5 + $0x820] ss:$16 sps:$4 sm:$0xff]  }
  0xa9   :  { %2459 = vmatprep.subr.bf16.mxu1 %v4558_v1  ;;  %v4622_v1 = vld [vmem:[#allocation5 + $0xa20] ss:$16 sps:$4 sm:$0xff]  }
  0xab   :  { %2417 = vmatpush2.bf16.msra.mxu0 %v4553_v2  ;;  %v4627_v2 = vld [vmem:[#allocation5 + $0x804] ss:$16 sps:$4 sm:$0xff]  }
  0xac   :  { %2460 = vmatpush2.bf16.msra.mxu1 %v4556_v3  ;;  %2418 = vmatprep.subr.bf16.mxu0 %v4561_v4  ;;  %v4630_v3 = vld [vmem:[#allocation5 + $0xa04] ss:$16 sps:$4 sm:$0xff]   ;;  %v4625_v4 = vld [vmem:[#allocation5 + $0x800] ss:$16 sps:$4 sm:$0xff]  }
  0xad   :  { %2461 = vmatprep.subr.bf16.mxu1 %v4564_v5  ;;  %v4628_v5 = vld [vmem:[#allocation5 + $0xa00] ss:$16 sps:$4 sm:$0xff]  }
  0xaf   :  { %2419 = vmatpush2.bf16.msra.mxu0 %v4559_v6  ;;  %v4633_v6 = vld [vmem:[#allocation5 + $0x9e4] ss:$16 sps:$4 sm:$0xff]  }
  0xb0   :  { %2462 = vmatpush2.bf16.msra.mxu1 %v4562_v7  ;;  %2420 = vmatprep.subr.bf16.mxu0 %v4567_v8  ;;  %v4636_v7 = vld [vmem:[#allocation5 + $0xb24] ss:$16 sps:$4 sm:$0xff]   ;;  %v4631_v8 = vld [vmem:[#allocation5 + $0x9e0] ss:$16 sps:$4 sm:$0xff]  }
  0xb1   :  { %2463 = vmatprep.subr.bf16.mxu1 %v4570_v9  ;;  %v4634_v9 = vld [vmem:[#allocation5 + $0xb20] ss:$16 sps:$4 sm:$0xff]  }
  0xb3   :  { %2421 = vmatpush2.bf16.msra.mxu0 %v4565_v10  ;;  %v4639_v10 = vld [vmem:[#allocation5 + $0x9c4] ss:$16 sps:$4 sm:$0xff]  }
  0xb4   :  { %2464 = vmatpush2.bf16.msra.mxu1 %v4568_v11  ;;  %2422 = vmatprep.subr.bf16.mxu0 %v4573_v14  ;;  %v4642_v11 = vld [vmem:[#allocation5 + $0xb04] ss:$16 sps:$4 sm:$0xff]   ;;  %v4637_v14 = vld [vmem:[#allocation5 + $0x9c0] ss:$16 sps:$4 sm:$0xff]  }
  0xb5   :  { %2465 = vmatprep.subr.bf16.mxu1 %v4576_v15  ;;  %v4640_v15 = vld [vmem:[#allocation5 + $0xb00] ss:$16 sps:$4 sm:$0xff]  }
  0xb7   :  { %2423 = vmatpush2.bf16.msra.mxu0 %v4571_v16  ;;  %v4645_v16 = vld [vmem:[#allocation5 + $0x9a4] ss:$16 sps:$4 sm:$0xff]  }
  0xb8   :  { %2466 = vmatpush2.bf16.msra.mxu1 %v4574_v17  ;;  %2424 = vmatprep.subr.bf16.mxu0 %v4579_v18  ;;  %v96_v17 = vld [vmem:[#allocation2 + $0x50] sm:$0xff] }
  0xb9   :  { %2467 = vmatprep.subr.bf16.mxu1 %v4582_v19  ;;  %v108_v18 = vld [vmem:[#allocation2 + $0xb0] sm:$0xff]  ;;  %v4648_v19 = vld [vmem:[#allocation5 + $0xec] ss:$16 sps:$4 sm:$0xff]  }
  0xbb   :  { %2425 = vmatpush2.bf16.msra.mxu0 %v4577_v20  ;;  %v4643_v20 = vld [vmem:[#allocation5 + $0x9a0] ss:$16 sps:$4 sm:$0xff]  }
  0xbc   :  { %2468 = vmatpush2.bf16.msra.mxu1 %v4580_v21  ;;  %2480 = vmatprep.subr.bf16.mxu0 %v4585_v26  ;;  %v5355_v21 = vpack.c.bf16 %v108_v18, %v96_v17  ;;  %v4652_v26 = vld [vmem:[#allocation5 + $0xc8] ss:$16 sps:$4 sm:$0xff]   ;;  %v4723_v18 = vld [vmem:[#allocation5 + $0x14c] ss:$16 sps:$4 sm:$0xff]  }
  0xbd   :  { %2523 = vmatprep.subr.bf16.mxu1 %v4588_v27  ;;  %v4657_v27 = vld [vmem:[#allocation5 + $0x964] ss:$16 sps:$4 sm:$0xff]   ;;  %v4718_v17 = vld [vmem:[#allocation5 + $0x228] ss:$16 sps:$4 sm:$0xff]  }
  0xbe   :  { %2427 = vmatmul.mubr.bf16.vlgmr.msra.gmra.mxu0 %v5342_v30 }
  0xbf   :  { %2470 = vmatmul.mubr.bf16.vlgmr.msra.gmra.mxu1 %v5344_v31  ;;  %2481 = vmatpush1.bf16.msra.mxu0 %v4583_v28  ;;  %v4660_v28 = vld [vmem:[#allocation5 + $0xac] ss:$16 sps:$4 sm:$0xff]  }
  0xc0   :  { %2524 = vmatpush1.bf16.msra.mxu1 %v4586_v29  ;;  %2482 = vmatprep.subr.bf16.mxu0 %v4591_v34  ;;  %v4655_v29 = vld [vmem:[#allocation5 + $0x960] ss:$16 sps:$4 sm:$0xff]   ;;  %v4666_v34 = vld [vmem:[#allocation5 + $0x8c] ss:$16 sps:$4 sm:$0xff]  }
  0xc1   :  { %2525 = vmatprep.subr.bf16.mxu1 %v4594_v35  ;;  %4249 = vmatprep.mubr.msk.bf16.mxu1 %vm2304_vm0, %v5346_v36  ;;  %v4661_v35 = vld [vmem:[#allocation5 + $0x940] ss:$16 sps:$4 sm:$0xff]  }
  0xc2   :  { %2512 = vmatprep.mubr.bf16.mxu0 %v5352_v48 }
  0xc3   :  { %2483 = vmatpush1.bf16.msra.mxu0 %v4589_v37  ;;  %v4664_v37 = vld [vmem:[#allocation5 + $0x88] ss:$16 sps:$4 sm:$0xff]  }
  0xc4   :  { %2526 = vmatpush1.bf16.msra.mxu1 %v4592_v38  ;;  %2484 = vmatprep.subr.bf16.mxu0 %v4597_v39  ;;  %v4669_v38 = vld [vmem:[#allocation5 + $0x924] ss:$16 sps:$4 sm:$0xff]   ;;  %v4672_v39 = vld [vmem:[#allocation5 + $0x6c] ss:$16 sps:$4 sm:$0xff]  }
  0xc5   :  { %2527 = vmatprep.subr.bf16.mxu1 %v4600_v40  ;;  %v4667_v40 = vld [vmem:[#allocation5 + $0x920] ss:$16 sps:$4 sm:$0xff]  }
  0xc7   :  { %2485 = vmatpush1.bf16.msra.mxu0 %v4595_v42  ;;  %v4678_v42 = vld [vmem:[#allocation5 + $0x4c] ss:$16 sps:$4 sm:$0xff]  }
  0xc8   :  { %2528 = vmatpush1.bf16.msra.mxu1 %v4598_v43  ;;  %2486 = vmatprep.subr.bf16.mxu0 %v4603_v46  ;;  %v4673_v43 = vld [vmem:[#allocation5 + $0x900] ss:$16 sps:$4 sm:$0xff]  }
  0xc9   :  { %2529 = vmatprep.subr.bf16.mxu1 %v4606_v49  ;;  %v94_v46 = vld [vmem:[#allocation2 + $0x40] sm:$0xff] }
  0xca   :  { %v106_v49 = vld [vmem:[#allocation2 + $0xa0] sm:$0xff] }
  0xcb   :  { %2487 = vmatpush1.bf16.msra.mxu0 %v4601_v50  ;;  %v4681_v50 = vld [vmem:[#allocation5 + $0x2c] ss:$16 sps:$4 sm:$0xff]  }
  0xcc   :  { %2530 = vmatpush1.bf16.msra.mxu1 %v4604_v51  ;;  %2488 = vmatprep.subr.bf16.mxu0 %v4609_v52  ;;  %v4684_v51 = vld [vmem:[#allocation5 + $0x2ec] ss:$16 sps:$4 sm:$0xff]   ;;  %v5359_v52 = vpack.c.bf16 %v106_v49, %v94_v46 }
  0xcd   :  { %2531 = vmatprep.subr.bf16.mxu1 %v4612_v55  ;;  %v4679_v55 = vld [vmem:[#allocation5 + $0x28] ss:$16 sps:$4 sm:$0xff]   ;;  %v4759_v46 = vld [vmem:[#allocation5 + $0x34c] ss:$16 sps:$4 sm:$0xff]  }
  0xce   :  { %v4762_v49 = vld [vmem:[#allocation5 + $0x48c] ss:$16 sps:$4 sm:$0xff]  }
  0xcf   :  { %2489 = vmatpush1.bf16.msra.mxu0 %v4607_v56  ;;  %v4682_v56 = vld [vmem:[#allocation5 + $0x2e8] ss:$16 sps:$4 sm:$0xff]  }
  0xd0   :  { %2532 = vmatpush1.bf16.msra.mxu1 %v4610_v57  ;;  %2490 = vmatprep.subr.bf16.mxu0 %v4615_v58  ;;  %v4687_v57 = vld [vmem:[#allocation5 + $0xc] ss:$16 sps:$4 sm:$0xff]  }
  0xd1   :  { %2533 = vmatprep.subr.bf16.mxu1 %v4618_v59  ;;  %v4690_v58 = vld [vmem:[#allocation5 + $0x2cc] ss:$16 sps:$4 sm:$0xff]   ;;  %v4685_v59 = vld [vmem:[#allocation5 + $0x8] ss:$16 sps:$4 sm:$0xff]  }
  0xd3   :  { %2491 = vmatpush1.bf16.msra.mxu0 %v4613_v60  ;;  %v4688_v60 = vld [vmem:[#allocation5 + $0x2c8] ss:$16 sps:$4 sm:$0xff]  }
  0xd4   :  { %2534 = vmatpush1.bf16.msra.mxu1 %v4616_v61  ;;  %2492 = vmatprep.subr.bf16.mxu0 %v4621_v62  ;;  %v4693_v61 = vld [vmem:[#allocation5 + $0x1ec] ss:$16 sps:$4 sm:$0xff]  }
  0xd5   :  { %2535 = vmatprep.subr.bf16.mxu1 %v4624_v63  ;;  %v4696_v62 = vld [vmem:[#allocation5 + $0x2ac] ss:$16 sps:$4 sm:$0xff]   ;;  %v4691_v63 = vld [vmem:[#allocation5 + $0x1e8] ss:$16 sps:$4 sm:$0xff]  }
  0xd7   :  { %2493 = vmatpush1.bf16.msra.mxu0 %v4619_v0  ;;  %v4694_v0 = vld [vmem:[#allocation5 + $0x2a8] ss:$16 sps:$4 sm:$0xff]  }
  0xd8   :  { %2536 = vmatpush1.bf16.msra.mxu1 %v4622_v1  ;;  %2494 = vmatprep.subr.bf16.mxu0 %v4627_v2  ;;  %v4699_v1 = vld [vmem:[#allocation5 + $0x1cc] ss:$16 sps:$4 sm:$0xff]  }
  0xd9   :  { %2537 = vmatprep.subr.bf16.mxu1 %v4630_v3  ;;  %v4702_v2 = vld [vmem:[#allocation5 + $0x28c] ss:$16 sps:$4 sm:$0xff]   ;;  %v4697_v3 = vld [vmem:[#allocation5 + $0x1c8] ss:$16 sps:$4 sm:$0xff]  }
  0xdb   :  { %2495 = vmatpush1.bf16.msra.mxu0 %v4625_v4  ;;  %v4700_v4 = vld [vmem:[#allocation5 + $0x288] ss:$16 sps:$4 sm:$0xff]  }
  0xdc   :  { %2538 = vmatpush1.bf16.msra.mxu1 %v4628_v5  ;;  %2496 = vmatprep.subr.bf16.mxu0 %v4633_v6  ;;  %v4705_v5 = vld [vmem:[#allocation5 + $0x1ac] ss:$16 sps:$4 sm:$0xff]  }
  0xdd   :  { %2551 = vmatprep.subr.bf16.mxu1 %v4636_v7  ;;  %v4708_v6 = vld [vmem:[#allocation5 + $0x26c] ss:$16 sps:$4 sm:$0xff]   ;;  %v4703_v7 = vld [vmem:[#allocation5 + $0x1a8] ss:$16 sps:$4 sm:$0xff]  }
  0xdf   :  { %2497 = vmatpush2.bf16.msra.mxu0 %v4631_v8  ;;  %v4711_v8 = vld [vmem:[#allocation5 + $0x18c] ss:$16 sps:$4 sm:$0xff]  }
  0xe0   :  { %2552 = vmatpush2.bf16.msra.mxu1 %v4634_v9  ;;  %2498 = vmatprep.subr.bf16.mxu0 %v4639_v10  ;;  %v4714_v9 = vld [vmem:[#allocation5 + $0x24c] ss:$16 sps:$4 sm:$0xff]   ;;  %v4709_v10 = vld [vmem:[#allocation5 + $0x188] ss:$16 sps:$4 sm:$0xff]  }
  0xe1   :  { %2553 = vmatprep.subr.bf16.mxu1 %v4642_v11  ;;  %v4712_v11 = vld [vmem:[#allocation5 + $0x248] ss:$16 sps:$4 sm:$0xff]  }
  0xe3   :  { %2499 = vmatpush2.bf16.msra.mxu0 %v4637_v14  ;;  %v4717_v14 = vld [vmem:[#allocation5 + $0x16c] ss:$16 sps:$4 sm:$0xff]  }
  0xe4   :  { %2554 = vmatpush2.bf16.msra.mxu1 %v4640_v15  ;;  %2500 = vmatprep.subr.bf16.mxu0 %v4645_v16  ;;  %v4720_v15 = vld [vmem:[#allocation5 + $0x22c] ss:$16 sps:$4 sm:$0xff]   ;;  %v4715_v16 = vld [vmem:[#allocation5 + $0x168] ss:$16 sps:$4 sm:$0xff]  }
  0xe5   :  { %2566 = vmatprep.subr.bf16.mxu1 %v4648_v19  ;;  %v4726_v19 = vld [vmem:[#allocation5 + $0x20c] ss:$16 sps:$4 sm:$0xff]  }
  0xe7   :  { %2556 = vmatmul.mubr.bf16.vlgmr.msra.gmra.mxu1 %v5355_v21  ;;  %2501 = vmatpush2.bf16.msra.mxu0 %v4643_v20  ;;  %v4721_v20 = vld [vmem:[#allocation5 + $0x148] ss:$16 sps:$4 sm:$0xff]  }
  0xe8   :  { %2567 = vmatpush1.bf16.msra.mxu1 %v4646_v22  ;;  %2502 = vmatprep.subr.bf16.mxu0 %v4651_v23  ;;  %v4724_v22 = vld [vmem:[#allocation5 + $0x208] ss:$16 sps:$4 sm:$0xff]   ;;  %v4729_v23 = vld [vmem:[#allocation5 + $0x12c] ss:$16 sps:$4 sm:$0xff]  }
  0xe9   :  { %2568 = vmatprep.subr.bf16.mxu1 %v4654_v24  ;;  %2598 = vmatprep.mubr.bf16.mxu1 %v5324_v53  ;;  %v4670_v53 = vld [vmem:[#allocation5 + $0x68] ss:$16 sps:$4 sm:$0xff]   ;;  %v4732_v24 = vld [vmem:[#allocation5 + $0x3ec] ss:$16 sps:$4 sm:$0xff]  }
  0xeb   :  { %2503 = vmatpush2.bf16.msra.mxu0 %v4649_v25  ;;  %v4727_v25 = vld [vmem:[#allocation5 + $0x128] ss:$16 sps:$4 sm:$0xff]  }
  0xec   :  { %2569 = vmatpush1.bf16.msra.mxu1 %v4652_v26  ;;  %2504 = vmatprep.subr.bf16.mxu0 %v4657_v27  ;;  %v4730_v26 = vld [vmem:[#allocation5 + $0x3e8] ss:$16 sps:$4 sm:$0xff]   ;;  %v4735_v27 = vld [vmem:[#allocation5 + $0x10c] ss:$16 sps:$4 sm:$0xff]  }
  0xed   :  { %2570 = vmatprep.subr.bf16.mxu1 %v4660_v28  ;;  %v4738_v28 = vld [vmem:[#allocation5 + $0x3cc] ss:$16 sps:$4 sm:$0xff]  }
  0xef   :  { %2505 = vmatpush2.bf16.msra.mxu0 %v4655_v29  ;;  %v4733_v29 = vld [vmem:[#allocation5 + $0x108] ss:$16 sps:$4 sm:$0xff]  }
  0xf0   :  { %2571 = vmatpush1.bf16.msra.mxu1 %v4658_v32  ;;  %2506 = vmatprep.subr.bf16.mxu0 %v4663_v33  ;;  %v4736_v32 = vld [vmem:[#allocation5 + $0x3c8] ss:$16 sps:$4 sm:$0xff]   ;;  %v4741_v33 = vld [vmem:[#allocation5 + $0x3ac] ss:$16 sps:$4 sm:$0xff]  }
  0xf1   :  { %2572 = vmatprep.subr.bf16.mxu1 %v4666_v34  ;;  %v4744_v34 = vld [vmem:[#allocation5 + $0x4ec] ss:$16 sps:$4 sm:$0xff]  }
  0xf3   :  { %2507 = vmatpush2.bf16.msra.mxu0 %v4661_v35  ;;  %v4739_v35 = vld [vmem:[#allocation5 + $0x3a8] ss:$16 sps:$4 sm:$0xff]  }
  0xf4   :  { %2573 = vmatpush1.bf16.msra.mxu1 %v4664_v37  ;;  %2508 = vmatprep.subr.bf16.mxu0 %v4669_v38  ;;  %v4742_v37 = vld [vmem:[#allocation5 + $0x4e8] ss:$16 sps:$4 sm:$0xff]   ;;  %v4747_v38 = vld [vmem:[#allocation5 + $0x38c] ss:$16 sps:$4 sm:$0xff]  }
  0xf5   :  { %2574 = vmatprep.subr.bf16.mxu1 %v4672_v39  ;;  %v4750_v39 = vld [vmem:[#allocation5 + $0x4cc] ss:$16 sps:$4 sm:$0xff]  }
  0xf7   :  { %2509 = vmatpush2.bf16.msra.mxu0 %v4667_v40  ;;  %v4745_v40 = vld [vmem:[#allocation5 + $0x388] ss:$16 sps:$4 sm:$0xff]  }
  0xf8   :  { %2575 = vmatpush1.bf16.msra.mxu1 %v4670_v53  ;;  %2510 = vmatprep.subr.bf16.mxu0 %v4675_v41  ;;  %v4748_v53 = vld [vmem:[#allocation5 + $0x4c8] ss:$16 sps:$4 sm:$0xff]   ;;  %v4753_v41 = vld [vmem:[#allocation5 + $0x36c] ss:$16 sps:$4 sm:$0xff]  }
  0xf9   :  { %2576 = vmatprep.subr.bf16.mxu1 %v4678_v42  ;;  %v4756_v42 = vld [vmem:[#allocation5 + $0x4ac] ss:$16 sps:$4 sm:$0xff]  }
  0xfb   :  { %2511 = vmatpush2.bf16.msra.mxu0 %v4673_v43  ;;  %v4751_v43 = vld [vmem:[#allocation5 + $0x368] ss:$16 sps:$4 sm:$0xff]  }
  0xfc   :  { %2577 = vmatpush1.bf16.msra.mxu1 %v4676_v44  ;;  %2609 = vmatprep.subr.bf16.mxu0 %v4684_v51  ;;  %v4754_v44 = vld [vmem:[#allocation5 + $0x4a8] ss:$16 sps:$4 sm:$0xff]   ;;  %v4765_v51 = vld [vmem:[#allocation5 + $0x32c] ss:$16 sps:$4 sm:$0xff]  }
  0xfd   :  { %2578 = vmatprep.subr.bf16.mxu1 %v4681_v50  ;;  %v4757_v50 = vld [vmem:[#allocation5 + $0x348] ss:$16 sps:$4 sm:$0xff]  }
  0xfe   :  { %2513 = vmatmul.mubr.bf16.vlgmr.msra.gmra.mxu0 %v5359_v52 }
  0xff   :  { %2610 = vmatpush1.bf16.msra.mxu0 %v4682_v56  ;;  %2641 = vmatprep.mubr.bf16.mxu0 %v5326_v54  ;;  %v4706_v54 = vld [vmem:[#allocation5 + $0x268] ss:$16 sps:$4 sm:$0xff]  }
 0x100   :  { %2579 = vmatpush1.bf16.msra.mxu1 %v4679_v55  ;;  %2611 = vmatprep.subr.bf16.mxu0 %v4690_v58  ;;  %v4768_v55 = vld [vmem:[#allocation5 + $0x46c] ss:$16 sps:$4 sm:$0xff]   ;;  %v4763_v56 = vld [vmem:[#allocation5 + $0x328] ss:$16 sps:$4 sm:$0xff]  }
 0x101   :  { %2580 = vmatprep.subr.bf16.mxu1 %v4687_v57  ;;  %v4771_v57 = vld [vmem:[#allocation5 + $0x30c] ss:$16 sps:$4 sm:$0xff]  }
 0x102   :  { %v4774_v58 = vld [vmem:[#allocation5 + $0x44c] ss:$16 sps:$4 sm:$0xff]  }
 0x103   :  { %2612 = vmatpush1.bf16.msra.mxu0 %v4688_v60  ;;  %v4772_v60 = vld [vmem:[#allocation5 + $0x448] ss:$16 sps:$4 sm:$0xff]  }
 0x104   :  { %2581 = vmatpush1.bf16.msra.mxu1 %v4685_v59  ;;  %2613 = vmatprep.subr.bf16.mxu0 %v4696_v62  ;;  %v4769_v59 = vld [vmem:[#allocation5 + $0x308] ss:$16 sps:$4 sm:$0xff]   ;;  %v4780_v62 = vld [vmem:[#allocation5 + $0x6ec] ss:$16 sps:$4 sm:$0xff]  }
 0x105   :  { %2582 = vmatprep.subr.bf16.mxu1 %v4693_v61  ;;  %v4777_v61 = vld [vmem:[#allocation5 + $0x42c] ss:$16 sps:$4 sm:$0xff]  }
 0x107   :  { %2614 = vmatpush1.bf16.msra.mxu0 %v4694_v0  ;;  %v4778_v0 = vld [vmem:[#allocation5 + $0x6e8] ss:$16 sps:$4 sm:$0xff]  }
 0x108   :  { %2583 = vmatpush2.bf16.msra.mxu1 %v4691_v63  ;;  %2615 = vmatprep.subr.bf16.mxu0 %v4702_v2  ;;  %v4775_v63 = vld [vmem:[#allocation5 + $0x428] ss:$16 sps:$4 sm:$0xff]   ;;  %v4786_v2 = vld [vmem:[#allocation5 + $0x6cc] ss:$16 sps:$4 sm:$0xff]  }
 0x109   :  { %2584 = vmatprep.subr.bf16.mxu1 %v4699_v1  ;;  %v4783_v1 = vld [vmem:[#allocation5 + $0x40c] ss:$16 sps:$4 sm:$0xff]  }
 0x10b   :  { %2616 = vmatpush1.bf16.msra.mxu0 %v4700_v4  ;;  %v4784_v4 = vld [vmem:[#allocation5 + $0x6c8] ss:$16 sps:$4 sm:$0xff]  }
 0x10c   :  { %2585 = vmatpush2.bf16.msra.mxu1 %v4697_v3  ;;  %2617 = vmatprep.subr.bf16.mxu0 %v4708_v6  ;;  %v4781_v3 = vld [vmem:[#allocation5 + $0x408] ss:$16 sps:$4 sm:$0xff]   ;;  %v4792_v6 = vld [vmem:[#allocation5 + $0x6ac] ss:$16 sps:$4 sm:$0xff]  }
 0x10d   :  { %2586 = vmatprep.subr.bf16.mxu1 %v4705_v5  ;;  %v4789_v5 = vld [vmem:[#allocation5 + $0x5ec] ss:$16 sps:$4 sm:$0xff]  }
 0x10f   :  { %2618 = vmatpush1.bf16.msra.mxu0 %v4706_v54  ;;  %v4790_v54 = vld [vmem:[#allocation5 + $0x6a8] ss:$16 sps:$4 sm:$0xff]  }
 0x110   :  { %2587 = vmatpush2.bf16.msra.mxu1 %v4703_v7  ;;  %2619 = vmatprep.subr.bf16.mxu0 %v4714_v9  ;;  %v4787_v7 = vld [vmem:[#allocation5 + $0x5e8] ss:$16 sps:$4 sm:$0xff]   ;;  %v4798_v9 = vld [vmem:[#allocation5 + $0x68c] ss:$16 sps:$4 sm:$0xff]  }
 0x111   :  { %2588 = vmatprep.subr.bf16.mxu1 %v4711_v8  ;;  %v4795_v8 = vld [vmem:[#allocation5 + $0x5cc] ss:$16 sps:$4 sm:$0xff]  }
 0x113   :  { %2620 = vmatpush1.bf16.msra.mxu0 %v4712_v11  ;;  %v4796_v11 = vld [vmem:[#allocation5 + $0x688] ss:$16 sps:$4 sm:$0xff]  }
 0x114   :  { %2589 = vmatpush2.bf16.msra.mxu1 %v4709_v10  ;;  %2621 = vmatprep.subr.bf16.mxu0 %v4720_v15  ;;  %v4793_v10 = vld [vmem:[#allocation5 + $0x5c8] ss:$16 sps:$4 sm:$0xff]  }
 0x115   :  { %2590 = vmatprep.subr.bf16.mxu1 %v4717_v14  ;;  %v4801_v14 = vld [vmem:[#allocation5 + $0x5ac] ss:$16 sps:$4 sm:$0xff]   ;;  %v4799_v15 = vld [vmem:[#allocation5 + $0x5a8] ss:$16 sps:$4 sm:$0xff]  }
 0x117   :  { %2622 = vmatpush1.bf16.msra.mxu0 %v4718_v17  ;;  %v4807_v17 = vld [vmem:[#allocation5 + $0x58c] ss:$16 sps:$4 sm:$0xff]  }
 0x118   :  { %2591 = vmatpush2.bf16.msra.mxu1 %v4715_v16  ;;  %2623 = vmatprep.subr.bf16.mxu0 %v4726_v19  ;;  %v4802_v16 = vld [vmem:[#allocation5 + $0x668] ss:$16 sps:$4 sm:$0xff]  }
 0x119   :  { %2592 = vmatprep.subr.bf16.mxu1 %v4723_v18  ;;  %v4805_v18 = vld [vmem:[#allocation5 + $0x588] ss:$16 sps:$4 sm:$0xff]  }
 0x11a   :  { %v4808_v19 = vld [vmem:[#allocation5 + $0x648] ss:$16 sps:$4 sm:$0xff]  }
 0x11b   :  { %2624 = vmatpush1.bf16.msra.mxu0 %v4724_v22  ;;  %v4816_v22 = vld [vmem:[#allocation5 + $0x62c] ss:$16 sps:$4 sm:$0xff]  }
 0x11c   :  { %2593 = vmatpush2.bf16.msra.mxu1 %v4721_v20  ;;  %2625 = vmatprep.subr.bf16.mxu0 %v4732_v24  ;;  %v4813_v20 = vld [vmem:[#allocation5 + $0x56c] ss:$16 sps:$4 sm:$0xff]   ;;  %v4814_v24 = vld [vmem:[#allocation5 + $0x628] ss:$16 sps:$4 sm:$0xff]  }
 0x11d   :  { %2594 = vmatprep.subr.bf16.mxu1 %v4729_v23  ;;  %v4811_v23 = vld [vmem:[#allocation5 + $0x568] ss:$16 sps:$4 sm:$0xff]  }
 0x11f   :  { %2626 = vmatpush2.bf16.msra.mxu0 %v4730_v26  ;;  %v4822_v26 = vld [vmem:[#allocation5 + $0x60c] ss:$16 sps:$4 sm:$0xff]  }
 0x120   :  { %2595 = vmatpush2.bf16.msra.mxu1 %v4727_v25  ;;  %2627 = vmatprep.subr.bf16.mxu0 %v4738_v28  ;;  %v4819_v25 = vld [vmem:[#allocation5 + $0x54c] ss:$16 sps:$4 sm:$0xff]   ;;  %v4820_v28 = vld [vmem:[#allocation5 + $0x608] ss:$16 sps:$4 sm:$0xff]  }
 0x121   :  { %2596 = vmatprep.subr.bf16.mxu1 %v4735_v27  ;;  %v4817_v27 = vld [vmem:[#allocation5 + $0x548] ss:$16 sps:$4 sm:$0xff]  }
 0x123   :  { %2628 = vmatpush2.bf16.msra.mxu0 %v4736_v32  ;;  %v4828_v32 = vld [vmem:[#allocation5 + $0x7ec] ss:$16 sps:$4 sm:$0xff]  }
 0x124   :  { %2597 = vmatpush2.bf16.msra.mxu1 %v4733_v29  ;;  %2629 = vmatprep.subr.bf16.mxu0 %v4741_v33  ;;  %v4825_v29 = vld [vmem:[#allocation5 + $0x52c] ss:$16 sps:$4 sm:$0xff]   ;;  %v4823_v33 = vld [vmem:[#allocation5 + $0x528] ss:$16 sps:$4 sm:$0xff]  }
 0x125   :  { %2652 = vmatprep.subr.bf16.mxu1 %v4744_v34  ;;  %v4826_v34 = vld [vmem:[#allocation5 + $0x7e8] ss:$16 sps:$4 sm:$0xff]  }
 0x127   :  { %2599 = vmatmul.mubr.bf16.vlgmr.msra.gmra.mxu1 %v5330_v12  ;;  %2630 = vmatpush2.bf16.msra.mxu0 %v4739_v35  ;;  %v4760_v12 = vld [vmem:[#allocation5 + $0x488] ss:$16 sps:$4 sm:$0xff]   ;;  %v4831_v35 = vld [vmem:[#allocation5 + $0x50c] ss:$16 sps:$4 sm:$0xff]  }
 0x128   :  { %2653 = vmatpush1.bf16.msra.mxu1 %v4742_v37  ;;  %2631 = vmatprep.subr.bf16.mxu0 %v4747_v38  ;;  %v4834_v37 = vld [vmem:[#allocation5 + $0x7cc] ss:$16 sps:$4 sm:$0xff]   ;;  %v4829_v38 = vld [vmem:[#allocation5 + $0x508] ss:$16 sps:$4 sm:$0xff]  }
 0x129   :  { %2654 = vmatprep.subr.bf16.mxu1 %v4750_v39  ;;  %2684 = vmatprep.mubr.bf16.mxu1 %v5336_v45  ;;  %v4766_v45 = vld [vmem:[#allocation5 + $0x468] ss:$16 sps:$4 sm:$0xff]  }
 0x12a   :  { %v4832_v39 = vld [vmem:[#allocation5 + $0x7c8] ss:$16 sps:$4 sm:$0xff]  }
 0x12b   :  { %2632 = vmatpush2.bf16.msra.mxu0 %v4745_v40  ;;  %v4837_v40 = vld [vmem:[#allocation5 + $0x7ac] ss:$16 sps:$4 sm:$0xff]  }
 0x12c   :  { %2655 = vmatpush1.bf16.msra.mxu1 %v4748_v53  ;;  %2633 = vmatprep.subr.bf16.mxu0 %v4753_v41  ;;  %v4840_v53 = vld [vmem:[#allocation5 + $0x8ec] ss:$16 sps:$4 sm:$0xff]   ;;  %v4835_v41 = vld [vmem:[#allocation5 + $0x7a8] ss:$16 sps:$4 sm:$0xff]  }
 0x12d   :  { %2656 = vmatprep.subr.bf16.mxu1 %v4756_v42  ;;  %v4838_v42 = vld [vmem:[#allocation5 + $0x8e8] ss:$16 sps:$4 sm:$0xff]  }
 0x12f   :  { %2634 = vmatpush2.bf16.msra.mxu0 %v4751_v43  ;;  %v4843_v43 = vld [vmem:[#allocation5 + $0x78c] ss:$16 sps:$4 sm:$0xff]  }
 0x130   :  { %2657 = vmatpush1.bf16.msra.mxu1 %v4754_v44  ;;  %2635 = vmatprep.subr.bf16.mxu0 %v4759_v46  ;;  %v4846_v44 = vld [vmem:[#allocation5 + $0x8cc] ss:$16 sps:$4 sm:$0xff]   ;;  %v4841_v46 = vld [vmem:[#allocation5 + $0x788] ss:$16 sps:$4 sm:$0xff]  }
 0x131   :  { %2658 = vmatprep.subr.bf16.mxu1 %v4762_v49  ;;  %v4844_v49 = vld [vmem:[#allocation5 + $0x8c8] ss:$16 sps:$4 sm:$0xff]  }
 0x133   :  { %2636 = vmatpush2.bf16.msra.mxu0 %v4757_v50  ;;  %v4849_v50 = vld [vmem:[#allocation5 + $0x76c] ss:$16 sps:$4 sm:$0xff]  }
 0x134   :  { %2659 = vmatpush1.bf16.msra.mxu1 %v4760_v12  ;;  %2637 = vmatprep.subr.bf16.mxu0 %v4765_v51  ;;  %v4852_v12 = vld [vmem:[#allocation5 + $0x8ac] ss:$16 sps:$4 sm:$0xff]   ;;  %v4847_v51 = vld [vmem:[#allocation5 + $0x768] ss:$16 sps:$4 sm:$0xff]  }
 0x135   :  { %2660 = vmatprep.subr.bf16.mxu1 %v4768_v55  ;;  %v4850_v55 = vld [vmem:[#allocation5 + $0x8a8] ss:$16 sps:$4 sm:$0xff]  }
 0x137   :  { %2638 = vmatpush2.bf16.msra.mxu0 %v4763_v56  ;;  %v4855_v56 = vld [vmem:[#allocation5 + $0x74c] ss:$16 sps:$4 sm:$0xff]  }
 0x138   :  { %2661 = vmatpush1.bf16.msra.mxu1 %v4766_v45  ;;  %2639 = vmatprep.subr.bf16.mxu0 %v4771_v57  ;;  %v4858_v45 = vld [vmem:[#allocation5 + $0x88c] ss:$16 sps:$4 sm:$0xff]   ;;  %v4853_v57 = vld [vmem:[#allocation5 + $0x748] ss:$16 sps:$4 sm:$0xff]  }
 0x139   :  { %2662 = vmatprep.subr.bf16.mxu1 %v4774_v58  ;;  %v4861_v58 = vld [vmem:[#allocation5 + $0x72c] ss:$16 sps:$4 sm:$0xff]  }
 0x13b   :  { %2640 = vmatpush2.bf16.msra.mxu0 %v4769_v59  ;;  %v4864_v59 = vld [vmem:[#allocation5 + $0x86c] ss:$16 sps:$4 sm:$0xff]  }
 0x13c   :  { %2663 = vmatpush1.bf16.msra.mxu1 %v4772_v60  ;;  %2695 = vmatprep.subr.bf16.mxu0 %v4780_v62  ;;  %v4859_v60 = vld [vmem:[#allocation5 + $0x728] ss:$16 sps:$4 sm:$0xff]   ;;  %v4870_v62 = vld [vmem:[#allocation5 + $0x84c] ss:$16 sps:$4 sm:$0xff]  }
 0x13d   :  { %2664 = vmatprep.subr.bf16.mxu1 %v4777_v61  ;;  %v4867_v61 = vld [vmem:[#allocation5 + $0x70c] ss:$16 sps:$4 sm:$0xff]  }
 0x13e   :  { %2642 = vmatmul.mubr.bf16.vlgmr.msra.gmra.mxu0 %v5332_v13  ;;  %v4804_v13 = vld [vmem:[#allocation5 + $0x66c] ss:$16 sps:$4 sm:$0xff]  }
 0x13f   :  { %2696 = vmatpush1.bf16.msra.mxu0 %v4778_v0  ;;  %2727 = vmatprep.mubr.bf16.mxu0 %v5338_v47  ;;  %v4810_v47 = vld [vmem:[#allocation5 + $0x64c] ss:$16 sps:$4 sm:$0xff]   ;;  %v4868_v0 = vld [vmem:[#allocation5 + $0x848] ss:$16 sps:$4 sm:$0xff]  }
 0x140   :  { %2665 = vmatpush1.bf16.msra.mxu1 %v4775_v63  ;;  %2697 = vmatprep.subr.bf16.mxu0 %v4786_v2  ;;  %v4865_v63 = vld [vmem:[#allocation5 + $0x708] ss:$16 sps:$4 sm:$0xff]   ;;  %v4876_v2 = vld [vmem:[#allocation5 + $0xaec] ss:$16 sps:$4 sm:$0xff]  }
 0x141   :  { %2666 = vmatprep.subr.bf16.mxu1 %v4783_v1  ;;  %v4873_v1 = vld [vmem:[#allocation5 + $0x82c] ss:$16 sps:$4 sm:$0xff]  }
 0x143   :  { %2698 = vmatpush1.bf16.msra.mxu0 %v4784_v4  ;;  %v4874_v4 = vld [vmem:[#allocation5 + $0xae8] ss:$16 sps:$4 sm:$0xff]  }
 0x144   :  { %2667 = vmatpush1.bf16.msra.mxu1 %v4781_v3  ;;  %2699 = vmatprep.subr.bf16.mxu0 %v4792_v6  ;;  %v4871_v3 = vld [vmem:[#allocation5 + $0x828] ss:$16 sps:$4 sm:$0xff]   ;;  %v4882_v6 = vld [vmem:[#allocation5 + $0xacc] ss:$16 sps:$4 sm:$0xff]  }
 0x145   :  { %2668 = vmatprep.subr.bf16.mxu1 %v4789_v5  ;;  %v4879_v5 = vld [vmem:[#allocation5 + $0x80c] ss:$16 sps:$4 sm:$0xff]  }
 0x147   :  { %2700 = vmatpush1.bf16.msra.mxu0 %v4790_v54  ;;  %v4880_v54 = vld [vmem:[#allocation5 + $0xac8] ss:$16 sps:$4 sm:$0xff]  }
 0x148   :  { %2669 = vmatpush2.bf16.msra.mxu1 %v4787_v7  ;;  %2701 = vmatprep.subr.bf16.mxu0 %v4798_v9  ;;  %v4877_v7 = vld [vmem:[#allocation5 + $0x808] ss:$16 sps:$4 sm:$0xff]   ;;  %v4888_v9 = vld [vmem:[#allocation5 + $0xaac] ss:$16 sps:$4 sm:$0xff]  }
 0x149   :  { %2670 = vmatprep.subr.bf16.mxu1 %v4795_v8  ;;  %v4885_v8 = vld [vmem:[#allocation5 + $0x9ec] ss:$16 sps:$4 sm:$0xff]  }
 0x14b   :  { %2702 = vmatpush1.bf16.msra.mxu0 %v4796_v11  ;;  %v4886_v11 = vld [vmem:[#allocation5 + $0xaa8] ss:$16 sps:$4 sm:$0xff]  }
 0x14c   :  { %2671 = vmatpush2.bf16.msra.mxu1 %v4793_v10  ;;  %2703 = vmatprep.subr.bf16.mxu0 %v4804_v13  ;;  %v4883_v10 = vld [vmem:[#allocation5 + $0x9e8] ss:$16 sps:$4 sm:$0xff]   ;;  %v4894_v13 = vld [vmem:[#allocation5 + $0xa8c] ss:$16 sps:$4 sm:$0xff]  }
 0x14d   :  { %2672 = vmatprep.subr.bf16.mxu1 %v4801_v14  ;;  %v4891_v14 = vld [vmem:[#allocation5 + $0x9cc] ss:$16 sps:$4 sm:$0xff]  }
 0x14f   :  { %2704 = vmatpush1.bf16.msra.mxu0 %v4802_v16  ;;  %v4897_v16 = vld [vmem:[#allocation5 + $0x9ac] ss:$16 sps:$4 sm:$0xff]  }
 0x150   :  { %2673 = vmatpush2.bf16.msra.mxu1 %v4799_v15  ;;  %2705 = vmatprep.subr.bf16.mxu0 %v4810_v47  ;;  %v4892_v15 = vld [vmem:[#allocation5 + $0xa88] ss:$16 sps:$4 sm:$0xff]  }
 0x151   :  { %2674 = vmatprep.subr.bf16.mxu1 %v4807_v17  ;;  %v4900_v17 = vld [vmem:[#allocation5 + $0xa6c] ss:$16 sps:$4 sm:$0xff]   ;;  %v4895_v47 = vld [vmem:[#allocation5 + $0x9a8] ss:$16 sps:$4 sm:$0xff]  }
 0x153   :  { %2706 = vmatpush1.bf16.msra.mxu0 %v4808_v19  ;;  %v4906_v19 = vld [vmem:[#allocation5 + $0xa4c] ss:$16 sps:$4 sm:$0xff]  }
 0x154   :  { %2675 = vmatpush2.bf16.msra.mxu1 %v4805_v18  ;;  %2707 = vmatprep.subr.bf16.mxu0 %v4816_v22  ;;  %v4903_v18 = vld [vmem:[#allocation5 + $0x98c] ss:$16 sps:$4 sm:$0xff]   ;;  %v4904_v22 = vld [vmem:[#allocation5 + $0xa48] ss:$16 sps:$4 sm:$0xff]  }
 0x155   :  { %2676 = vmatprep.subr.bf16.mxu1 %v4813_v20  ;;  %v4901_v20 = vld [vmem:[#allocation5 + $0x988] ss:$16 sps:$4 sm:$0xff]  }
 0x157   :  { %2708 = vmatpush1.bf16.msra.mxu0 %v4814_v24  ;;  %v4912_v24 = vld [vmem:[#allocation5 + $0xa2c] ss:$16 sps:$4 sm:$0xff]  }
 0x158   :  { %2677 = vmatpush2.bf16.msra.mxu1 %v4811_v23  ;;  %2709 = vmatprep.subr.bf16.mxu0 %v4822_v26  ;;  %v4909_v23 = vld [vmem:[#allocation5 + $0x96c] ss:$16 sps:$4 sm:$0xff]   ;;  %v4910_v26 = vld [vmem:[#allocation5 + $0xa28] ss:$16 sps:$4 sm:$0xff]  }
 0x159   :  { %2678 = vmatprep.subr.bf16.mxu1 %v4819_v25  ;;  %v4907_v25 = vld [vmem:[#allocation5 + $0x968] ss:$16 sps:$4 sm:$0xff]  }
 0x15b   :  { %2710 = vmatpush1.bf16.msra.mxu0 %v4820_v28  ;;  %v4918_v28 = vld [vmem:[#allocation5 + $0xa0c] ss:$16 sps:$4 sm:$0xff]  }
 0x15c   :  { %2679 = vmatpush2.bf16.msra.mxu1 %v4817_v27  ;;  %2711 = vmatprep.subr.bf16.mxu0 %v4828_v32  ;;  %v4915_v27 = vld [vmem:[#allocation5 + $0x94c] ss:$16 sps:$4 sm:$0xff]   ;;  %v4916_v32 = vld [vmem:[#allocation5 + $0xa08] ss:$16 sps:$4 sm:$0xff]  }
 0x15d   :  { %2680 = vmatprep.subr.bf16.mxu1 %v4825_v29  ;;  %v4913_v29 = vld [vmem:[#allocation5 + $0x948] ss:$16 sps:$4 sm:$0xff]  }
 0x15f   :  { %2712 = vmatpush2.bf16.msra.mxu0 %v4826_v34  ;;  %v4924_v34 = vld [vmem:[#allocation5 + $0xb2c] ss:$16 sps:$4 sm:$0xff]  }
 0x160   :  { %2681 = vmatpush2.bf16.msra.mxu1 %v4823_v33  ;;  %2713 = vmatprep.subr.bf16.mxu0 %v4834_v37  ;;  %v4921_v33 = vld [vmem:[#allocation5 + $0x92c] ss:$16 sps:$4 sm:$0xff]   ;;  %v4922_v37 = vld [vmem:[#allocation5 + $0xb28] ss:$16 sps:$4 sm:$0xff]  }
 0x161   :  { %2682 = vmatprep.subr.bf16.mxu1 %v4831_v35  ;;  %v4919_v35 = vld [vmem:[#allocation5 + $0x928] ss:$16 sps:$4 sm:$0xff]  }
 0x163   :  { %2714 = vmatpush2.bf16.msra.mxu0 %v4832_v39  ;;  %v4930_v39 = vld [vmem:[#allocation5 + $0xb0c] ss:$16 sps:$4 sm:$0xff]  }
 0x164   :  { %2683 = vmatpush2.bf16.msra.mxu1 %v4829_v38  ;;  %2715 = vmatprep.subr.bf16.mxu0 %v4837_v40  ;;  %v4927_v38 = vld [vmem:[#allocation5 + $0x90c] ss:$16 sps:$4 sm:$0xff]   ;;  %v2385_v40 = vpop.f32.mrf.mxu1 }
 0x165   :  { %2738 = vmatprep.subr.bf16.mxu1 %v4840_v53  ;;  %v4925_v53 = vld [vmem:[#allocation5 + $0x908] ss:$16 sps:$4 sm:$0xff]  }
 0x167   :  { %2685 = vmatmul.mubr.bf16.vlgmr.msra.gmra.mxu1 %v5342_v30  ;;  %2716 = vmatpush2.bf16.msra.mxu0 %v4835_v41  ;;  %v4856_v30 = vld [vmem:[#allocation5 + $0x888] ss:$16 sps:$4 sm:$0xff]  }
 0x168   :  { %2739 = vmatpush1.bf16.msra.mxu1 %v4838_v42  ;;  %2717 = vmatprep.subr.bf16.mxu0 %v4843_v43  ;;  %v4928_v41 = vld [vmem:[#allocation5 + $0xb08] ss:$16 sps:$4 sm:$0xff]   ;;  %v2342_v43 = vpop.f32.mrf.mxu0 }
 0x169   :  { %2740 = vmatprep.subr.bf16.mxu1 %v4846_v44  ;;  %2770 = vmatprep.mubr.bf16.mxu1 %v5352_v48  ;;  %v4862_v48 = vld [vmem:[#allocation5 + $0x868] ss:$16 sps:$4 sm:$0xff]   ;;  %v484_v44 = vlaneseq }
 0x16a   :  { %v4933_v42 = vld [vmem:[#allocation8 + $0xe4] ss:$16 sps:$4 sm:$0xff]  }
 0x16b   :  { %2718 = vmatpush2.bf16.msra.mxu0 %v4841_v46  ;;  %v2387_v46 = vpop.f32.mrf.mxu1 }
 0x16c   :  { %2741 = vmatpush1.bf16.msra.mxu1 %v4844_v49  ;;  %2719 = vmatprep.subr.bf16.mxu0 %v4849_v50  ;;  %v4931_v49 = vld [vmem:[#allocation8 + $0xe0] ss:$16 sps:$4 sm:$0xff]   ;;  %v4936_v50 = vld [vmem:[#allocation8 + $0xc4] ss:$16 sps:$4 sm:$0xff]  }
 0x16d   :  { %2742 = vmatprep.subr.bf16.mxu1 %v4852_v12  ;;  %v2344_v12 = vpop.f32.mrf.mxu0 }
 0x16f   :  { %2720 = vmatpush2.bf16.msra.mxu0 %v4847_v51  ;;  %v5374_v51 = vshrl.u32 %v484_v44, 7 }
 0x170   :  { %2743 = vmatpush1.bf16.msra.mxu1 %v4850_v55  ;;  %2721 = vmatprep.subr.bf16.mxu0 %v4855_v56  ;;  %v2389_v55 = vpop.f32.mrf.mxu1  ;;  %v4934_v56 = vld [vmem:[#allocation8 + $0xc0] ss:$16 sps:$4 sm:$0xff]  }
 0x171   :  { %2744 = vmatprep.subr.bf16.mxu1 %v4858_v45  ;;  %v4939_v45 = vld [vmem:[#allocation8 + $0xa4] ss:$16 sps:$4 sm:$0xff]  }
 0x173   :  { %2722 = vmatpush2.bf16.msra.mxu0 %v4853_v57  ;;  %v2346_v57 = vpop.f32.mrf.mxu0 }
 0x174   :  { %2745 = vmatpush1.bf16.msra.mxu1 %v4856_v30  ;;  %2723 = vmatprep.subr.bf16.mxu0 %v4861_v58  ;;  %v486_v30 = vsub.s32 0, %v5374_v51  ;;  %v2391_v58 = vpop.f32.mrf.mxu1 }
 0x175   :  { %2746 = vmatprep.subr.bf16.mxu1 %v4864_v59  ;;  %v4937_v59 = vld [vmem:[#allocation8 + $0xa0] ss:$16 sps:$4 sm:$0xff]  }
 0x177   :  { %2724 = vmatpush2.bf16.msra.mxu0 %v4859_v60  ;;  %v5377_v60 = vld [vmem:[#allocation7] sm:$0xf] }
 0x178   :  { %2747 = vmatpush1.bf16.msra.mxu1 %v4862_v48  ;;  %2725 = vmatprep.subr.bf16.mxu0 %v4867_v61  ;;  %v4942_v48 = vld [vmem:[#allocation8 + $0x84] ss:$16 sps:$4 sm:$0xff]   ;;  %v2348_v61 = vpop.f32.mrf.mxu0 }
 0x179   :  { %2748 = vmatprep.subr.bf16.mxu1 %v4870_v62  ;;  %v487_v62 = vrot.slane %v5377_v60, %v486_v30 }
 0x17b   :  { %2726 = vmatpush2.bf16.msra.mxu0 %v4865_v63  ;;  %v4940_v63 = vld [vmem:[#allocation8 + $0x80] ss:$16 sps:$4 sm:$0xff]  }
 0x17c   :  { %2749 = vmatpush1.bf16.msra.mxu1 %v4868_v0  ;;  %2781 = vmatprep.subr.bf16.mxu0 %v4876_v2 }
 0x17d   :  { %2750 = vmatprep.subr.bf16.mxu1 %v4873_v1  ;;  %v4945_v1 = vld [vmem:[#allocation8 + $0x64] ss:$16 sps:$4 sm:$0xff]  }
 0x17e   :  { %2728 = vmatmul.mubr.bf16.vlgmr.msra.gmra.mxu0 %v5344_v31  ;;  %v4889_v31 = vld [vmem:[#allocation5 + $0x9c8] ss:$16 sps:$4 sm:$0xff]   ;;  %v2428_v0 = vpop.f32.mrf.mxu0 }
 0x17f   :  { %2782 = vmatpush1.bf16.msra.mxu0 %v4874_v4  ;;  %4250 = vmatprep.mubr.msk.bf16.mxu0 %vm2304_vm0, %v5346_v36  ;;  %v4898_v36 = vld [vmem:[#allocation5 + $0xa68] ss:$16 sps:$4 sm:$0xff]   ;;  %v2343_v4 = vadd.f32 %v2342_v43, %v487_v62 }
 0x180   :  { %2751 = vmatpush1.bf16.msra.mxu1 %v4871_v3  ;;  %2783 = vmatprep.subr.bf16.mxu0 %v4882_v6  ;;  %v2430_v6 = vpop.f32.mrf.mxu0 }
 0x181   :  { %2752 = vmatprep.subr.bf16.mxu1 %v4879_v5  ;;  %v4943_v5 = vld [vmem:[#allocation8 + $0x60] ss:$16 sps:$4 sm:$0xff]  }
 0x183   :  { %2784 = vmatpush1.bf16.msra.mxu0 %v4880_v54 }
 0x184   :  { %2753 = vmatpush1.bf16.msra.mxu1 %v4877_v7  ;;  %2785 = vmatprep.subr.bf16.mxu0 %v4888_v9  ;;  %v4948_v7 = vld [vmem:[#allocation8 + $0x44] ss:$16 sps:$4 sm:$0xff]   ;;  %v2386_v9 = vadd.f32 %v2385_v40, %v2343_v4 }
 0x185   :  { %2754 = vmatprep.subr.bf16.mxu1 %v4885_v8 }
 0x187   :  { %2786 = vmatpush1.bf16.msra.mxu0 %v4886_v11  ;;  %v4946_v11 = vld [vmem:[#allocation8 + $0x40] ss:$16 sps:$4 sm:$0xff]  }
 0x188   :  { %2755 = vmatpush2.bf16.msra.mxu1 %v4883_v10  ;;  %2787 = vmatprep.subr.bf16.mxu0 %v4894_v13  ;;  %v2347_v10 = vadd.f32 %v2346_v57, %v487_v62  ;;  %v4951_v13 = vld [vmem:[#allocation8 + $0x24] ss:$16 sps:$4 sm:$0xff]   ;;  %v5027_v57 = vld [vmem:[#allocation8 + $0x2e0] ss:$16 sps:$4 sm:$0xff]  }
 0x189   :  { %2756 = vmatprep.subr.bf16.mxu1 %v4891_v14  ;;  %v2432_v14 = vpop.f32.mrf.mxu0 }
 0x18b   :  { %2788 = vmatpush1.bf16.msra.mxu0 %v4892_v15 }
 0x18c   :  { %2757 = vmatpush2.bf16.msra.mxu1 %v4889_v31  ;;  %2789 = vmatprep.subr.bf16.mxu0 %v4900_v17 }
 0x18d   :  { %2758 = vmatprep.subr.bf16.mxu1 %v4897_v16  ;;  %v2429_v16 = vadd.f32 %v2428_v0, %v2386_v9 }
 0x18f   :  { %2790 = vmatpush1.bf16.msra.mxu0 %v4898_v36 }
 0x190   :  { %2759 = vmatpush2.bf16.msra.mxu1 %v4895_v47  ;;  %2791 = vmatprep.subr.bf16.mxu0 %v4906_v19  ;;  %v2390_v47 = vadd.f32 %v2389_v55, %v2347_v10  ;;  %v4949_v19 = vld [vmem:[#allocation8 + $0x20] ss:$16 sps:$4 sm:$0xff]  }
 0x191   :  { %2760 = vmatprep.subr.bf16.mxu1 %v4903_v18  ;;  %v4961_v10 = vld [vmem:[#allocation8 + $0x1a0] ss:$16 sps:$4 sm:$0xff]  }
 0x193   :  { %2792 = vmatpush1.bf16.msra.mxu0 %v4904_v22  ;;  %v4954_v22 = vld [vmem:[#allocation8 + $0x4] ss:$16 sps:$4 sm:$0xff]  }
 0x194   :  { %2761 = vmatpush2.bf16.msra.mxu1 %v4901_v20  ;;  %2793 = vmatprep.subr.bf16.mxu0 %v4912_v24  ;;  %v2434_v20 = vpop.f32.mrf.mxu0 }
 0x195   :  { %2762 = vmatprep.subr.bf16.mxu1 %v4909_v23 }
 0x197   :  { %2794 = vmatpush1.bf16.msra.mxu0 %v4910_v26 }
 0x198   :  { %2763 = vmatpush2.bf16.msra.mxu1 %v4907_v25  ;;  %2795 = vmatprep.subr.bf16.mxu0 %v4918_v28  ;;  %v2433_v25 = vadd.f32 %v2432_v14, %v2390_v47  ;;  %v4966_v14 = vld [vmem:[#allocation8 + $0x184] ss:$16 sps:$4 sm:$0xff]  }
 0x199   :  { %2764 = vmatprep.subr.bf16.mxu1 %v4915_v27 }
 0x19b   :  { %2796 = vmatpush1.bf16.msra.mxu0 %v4916_v32 }
 0x19c   :  { %2765 = vmatpush2.bf16.msra.mxu1 %v4913_v29  ;;  %2809 = vmatprep.subr.bf16.mxu0 %v4924_v34 }
 0x19d   :  { %2766 = vmatprep.subr.bf16.mxu1 %v4921_v33  ;;  %v4952_v33 = vld [vmem:[#allocation8] ss:$16 sps:$4 sm:$0xff]  }
 0x19f   :  { %2810 = vmatpush2.bf16.msra.mxu0 %v4922_v37 }
 0x1a0   :  { %2767 = vmatpush2.bf16.msra.mxu1 %v4919_v35  ;;  %2811 = vmatprep.subr.bf16.mxu0 %v4930_v39  ;;  %v4957_v35 = vld [vmem:[#allocation8 + $0x1e4] ss:$16 sps:$4 sm:$0xff]  }
 0x1a1   :  { %2768 = vmatprep.subr.bf16.mxu1 %v4927_v38 }
 0x1a3   :  { %2812 = vmatpush2.bf16.msra.mxu0 %v4928_v41 }
 0x1a4   :  { %2769 = vmatpush2.bf16.msra.mxu1 %v4925_v53  ;;  %3690 = vmatprep.subr.bf16.mxu0 %v4933_v42 }
 0x1a6   :  { %2814 = vmatmul.mubr.bf16.vlgmr.msra.gmra.mxu0 %v5355_v21  ;;  %v2471_v21 = vpop.f32.mrf.mxu1 }
 0x1a7   :  { %2771 = vmatmul.mubr.bf16.vlgmr.msra.gmra.mxu1 %v5359_v52  ;;  %3691 = vmatpush1.bf16.msra.mxu0 %v4931_v49  ;;  %v490_v52 = vsub.s32 1, %v5374_v51  ;;  %v2472_v24 = vadd.f32 %v2471_v21, %v2429_v16  ;;  %v5038_v16 = vld [vmem:[#allocation8 + $0x284] ss:$16 sps:$4 sm:$0xff]  }
 0x1a8   :  { %3692 = vmatprep.subr.bf16.mxu0 %v4936_v50  ;;  %v2473_v3 = vpop.f32.mrf.mxu1  ;;  %v4960_v50 = vld [vmem:[#allocation8 + $0x1c4] ss:$16 sps:$4 sm:$0xff]  }
 0x1a9   :  { %v491_v2 = vrot.slane %v5377_v60, %v490_v52 }
 0x1aa   :  { %v2475_v8 = vpop.f32.mrf.mxu1 }
 0x1ab   :  { %3693 = vmatpush1.bf16.msra.mxu0 %v4934_v56  ;;  %v2345_v54 = vadd.f32 %v2344_v12, %v491_v2  ;;  %v2349_v15 = vadd.f32 %v2348_v61, %v491_v2  ;;  %v2476_v37 = vadd.f32 %v2475_v8, %v2433_v25  ;;  %v5030_v2 = vld [vmem:[#allocation8 + $0x2c0] ss:$16 sps:$4 sm:$0xff]   ;;  %v4972_v25 = vld [vmem:[#allocation8 + $0x144] ss:$16 sps:$4 sm:$0xff]  }
 0x1ac   :  { %3694 = vmatprep.subr.bf16.mxu0 %v4939_v45  ;;  %v2477_v17 = vpop.f32.mrf.mxu1 }
 0x1ad   :  { %v2388_v31 = vadd.f32 %v2387_v46, %v2345_v54  ;;  %v2392_v23 = vadd.f32 %v2391_v58, %v2349_v15  ;;  %v4955_v46 = vld [vmem:[#allocation8 + $0x1e0] ss:$16 sps:$4 sm:$0xff]   ;;  %v5029_v58 = vld [vmem:[#allocation8 + $0x2e4] ss:$16 sps:$4 sm:$0xff]  }
 0x1ae   :  { %v2557_v18 = vpop.f32.mrf.mxu1  ;;  %3733 = vmatprep.subr.bf16.mxu1 %v5029_v58 }
 0x1af   :  { %3695 = vmatpush1.bf16.msra.mxu0 %v4937_v59  ;;  %v2431_v36 = vadd.f32 %v2430_v6, %v2388_v31  ;;  %v2435_v28 = vadd.f32 %v2434_v20, %v2392_v23  ;;  %v5032_v59 = vld [vmem:[#allocation8 + $0x2c4] ss:$16 sps:$4 sm:$0xff]   ;;  %3734 = vmatpush1.bf16.msra.mxu1 %v5027_v57  ;;  %v5036_v20 = vld [vmem:[#allocation8 + $0x280] ss:$16 sps:$4 sm:$0xff]  }
 0x1b0   :  { %3696 = vmatprep.subr.bf16.mxu0 %v4942_v48  ;;  %v2559_v29 = vpop.f32.mrf.mxu1  ;;  %3735 = vmatprep.subr.bf16.mxu1 %v5032_v59  ;;  %v5035_v6 = vld [vmem:[#allocation8 + $0x2a4] ss:$16 sps:$4 sm:$0xff]  }
 0x1b1   :  { %v2474_v27 = vadd.f32 %v2473_v3, %v2431_v36  ;;  %v2478_v53 = vadd.f32 %v2477_v17, %v2435_v28  ;;  %v4964_v36 = vld [vmem:[#allocation8 + $0x180] ss:$16 sps:$4 sm:$0xff]  }
 0x1b2   :  { %v2561_v41 = vpop.f32.mrf.mxu1  ;;  %v4970_v28 = vld [vmem:[#allocation8 + $0x140] ss:$16 sps:$4 sm:$0xff]  }
 0x1b3   :  { %3697 = vmatpush1.bf16.msra.mxu0 %v4940_v63  ;;  %v4958_v63 = vld [vmem:[#allocation8 + $0x1c0] ss:$16 sps:$4 sm:$0xff]   ;;  %3736 = vmatpush1.bf16.msra.mxu1 %v5030_v2 }
 0x1b4   :  { %3698 = vmatprep.subr.bf16.mxu0 %v4945_v1  ;;  %v2563_v48 = vpop.f32.mrf.mxu1  ;;  %v4963_v1 = vld [vmem:[#allocation8 + $0x1a4] ss:$16 sps:$4 sm:$0xff]   ;;  %3737 = vmatprep.subr.bf16.mxu1 %v5035_v6  ;;  %v5048_v2 = vld [vmem:[#allocation8 + $0x200] ss:$16 sps:$4 sm:$0xff]  }
 0x1b5   :  { %v5051_v6 = vld [vmem:[#allocation8 + $0x3e0] ss:$16 sps:$4 sm:$0xff]  }
 0x1b7   :  { %3699 = vmatpush1.bf16.msra.mxu0 %v4943_v5 }
 0x1b8   :  { %3700 = vmatprep.subr.bf16.mxu0 %v4948_v7 }
 0x1bb   :  { %3701 = vmatpush1.bf16.msra.mxu0 %v4946_v11 }
 0x1bc   :  { %3702 = vmatprep.subr.bf16.mxu0 %v4951_v13  ;;  %v5033_v13 = vld [vmem:[#allocation8 + $0x2a0] ss:$16 sps:$4 sm:$0xff]  }
 0x1bd   :  { %3738 = vmatpush1.bf16.msra.mxu1 %v5033_v13  ;;  %v5057_v13 = vld [vmem:[#allocation8 + $0x3a0] ss:$16 sps:$4 sm:$0xff]  }
 0x1be   :  { %v2514_v26 = vpop.f32.mrf.mxu0  ;;  %3739 = vmatprep.subr.bf16.mxu1 %v5038_v16  ;;  %v5062_v16 = vld [vmem:[#allocation8 + $0x384] ss:$16 sps:$4 sm:$0xff]  }
 0x1bf   :  { %v2515_v32 = vadd.f32 %v2514_v26, %v2472_v24  ;;  %3703 = vmatpush1.bf16.msra.mxu0 %v4949_v19  ;;  %v4969_v19 = vld [vmem:[#allocation8 + $0x164] ss:$16 sps:$4 sm:$0xff]   ;;  %v4967_v24 = vld [vmem:[#allocation8 + $0x160] ss:$16 sps:$4 sm:$0xff]  }
 0x1c0   :  { %v2516_v34 = vpop.f32.mrf.mxu0  ;;  %3704 = vmatprep.subr.bf16.mxu0 %v4954_v22  ;;  %v5041_v22 = vld [vmem:[#allocation8 + $0x264] ss:$16 sps:$4 sm:$0xff]   ;;  %v5039_v26 = vld [vmem:[#allocation8 + $0x260] ss:$16 sps:$4 sm:$0xff]  }
 0x1c1   :  { %v5386_v38 = vadd.f32 %v2557_v18, %v2515_v32  ;;  %v2517_v39 = vadd.f32 %v2516_v34, %v2474_v27  ;;  %3740 = vmatpush1.bf16.msra.mxu1 %v5036_v20  ;;  %v5044_v27 = vld [vmem:[#allocation8 + $0x244] ss:$16 sps:$4 sm:$0xff]   ;;  %v5042_v32 = vld [vmem:[#allocation8 + $0x240] ss:$16 sps:$4 sm:$0xff]  }
 0x1c2   :  { %v2518_v40 = vpop.f32.mrf.mxu0  ;;  %3741 = vmatprep.subr.bf16.mxu1 %v5041_v22  ;;  %v5068_v20 = vld [vmem:[#allocation8 + $0x344] ss:$16 sps:$4 sm:$0xff]   ;;  %v5000_v22 = vld [vmem:[#allocation8 + $0x8] ss:$16 sps:$4 sm:$0xff]  }
 0x1c3   :  { %v2832_v42 = vmul.f32 %v5386_v38, %v5386_v38  ;;  %v5390_v43 = vadd.f32 %v2559_v29, %v2517_v39  ;;  %v2519_v44 = vadd.f32 %v2518_v40, %v2476_v37  ;;  %3705 = vmatpush1.bf16.msra.mxu0 %v4952_v33  ;;  %v4975_v29 = vld [vmem:[#allocation8 + $0x124] ss:$16 sps:$4 sm:$0xff]   ;;  %v4973_v33 = vld [vmem:[#allocation8 + $0x120] ss:$16 sps:$4 sm:$0xff]  }
 0x1c4   :  { %v2520_v49 = vpop.f32.mrf.mxu0  ;;  %3706 = vmatprep.subr.bf16.mxu0 %v4957_v35  ;;  %v4978_v35 = vld [vmem:[#allocation8 + $0x104] ss:$16 sps:$4 sm:$0xff]   ;;  %v4976_v40 = vld [vmem:[#allocation8 + $0x100] ss:$16 sps:$4 sm:$0xff]  }
 0x1c5   :  { %v2840_v12 = vmul.f32 %v2832_v42, %v5386_v38  ;;  %v2833_v55 = vmul.f32 %v5390_v43, %v5390_v43  ;;  %v5395_v56 = vadd.f32 %v2561_v41, %v2519_v44  ;;  %v2521_v45 = vadd.f32 %v2520_v49, %v2478_v53  ;;  %3742 = vmatpush1.bf16.msra.mxu1 %v5039_v26  ;;  %v4981_v42 = vld [vmem:[#allocation8 + $0xec] ss:$16 sps:$4 sm:$0xff]   ;;  %v5003_v26 = vld [vmem:[#allocation8 + $0x1e8] ss:$16 sps:$4 sm:$0xff]  }
 0x1c6   :  { %3743 = vmatprep.subr.bf16.mxu1 %v5044_v27  ;;  %v5008_v27 = vld [vmem:[#allocation8 + $0x1cc] ss:$16 sps:$4 sm:$0xff]  }
 0x1c7   :  { %v2848_v21 = vmul.f32 0.044715, %v2840_v12  ;;  %v2841_v61 = vmul.f32 %v2833_v55, %v5390_v43  ;;  %v2836_v62 = vmul.f32 %v5395_v56, %v5395_v56  ;;  %3707 = vmatpush2.bf16.msra.mxu0 %v4955_v46  ;;  %v5400_v0 = vadd.f32 %v2563_v48, %v2521_v45 }
 0x1c8   :  { %3708 = vmatprep.subr.bf16.mxu0 %v4960_v50  ;;  %v2828_v46 = vmul.f32 0.5, %v5395_v56  ;;  %v2825_v50 = vmul.f32 0.5, %v5390_v43  ;;  %v2824_v45 = vmul.f32 0.5, %v5386_v38 }
 0x1c9   :  { %v2856_v3 = vadd.f32 %v2848_v21, %v5386_v38  ;;  %v2849_v4 = vmul.f32 0.044715, %v2841_v61  ;;  %v2844_v5 = vmul.f32 %v2836_v62, %v5395_v56  ;;  %v2837_v7 = vmul.f32 %v5400_v0, %v5400_v0  ;;  %3744 = vmatpush1.bf16.msra.mxu1 %v5042_v32  ;;  %v4979_v61 = vld [vmem:[#allocation8 + $0xe8] ss:$16 sps:$4 sm:$0xff]  }
 0x1ca   :  { %v2829_v12 = vmul.f32 0.5, %v5400_v0  ;;  %v4982_v38 = vld [vmem:[#allocation8 + $0xc8] ss:$16 sps:$4 sm:$0xff]  }
 0x1cb   :  { %v2864_v54 = vmul.f32 0.7978846, %v2856_v3  ;;  %v2857_v8 = vadd.f32 %v2849_v4, %v5390_v43  ;;  %v2852_v9 = vmul.f32 0.044715, %v2844_v5  ;;  %3709 = vmatpush2.bf16.msra.mxu0 %v4958_v63  ;;  %v2845_v11 = vmul.f32 %v2837_v7, %v5400_v0  ;;  %v4984_v63 = vld [vmem:[#allocation8 + $0xcc] ss:$16 sps:$4 sm:$0xff]  }
 0x1cc   :  { %3710 = vmatprep.subr.bf16.mxu0 %v4963_v1  ;;  %v5045_v1 = vld [vmem:[#allocation8 + $0x220] ss:$16 sps:$4 sm:$0xff]   ;;  %v4987_v43 = vld [vmem:[#allocation8 + $0xac] ss:$16 sps:$4 sm:$0xff]   ;;  %v4985_v3 = vld [vmem:[#allocation8 + $0xa8] ss:$16 sps:$4 sm:$0xff]  }
 0x1cd   :  { %v2865_v31 = vmul.f32 0.7978846, %v2857_v8  ;;  %v2860_v15 = vadd.f32 %v2852_v9, %v5395_v56  ;;  %v2853_v17 = vmul.f32 0.044715, %v2845_v11  ;;  %5123 = vtanh.f32 %v2864_v54  ;;  %v5047_v56 = vld [vmem:[#allocation8 + $0x224] ss:$16 sps:$4 sm:$0xff]  }
 0x1ce   :  { %3745 = vmatprep.subr.bf16.mxu1 %v5047_v56  ;;  %v4990_v4 = vld [vmem:[#allocation8 + $0x8c] ss:$16 sps:$4 sm:$0xff]   ;;  %v5053_v5 = vld [vmem:[#allocation8 + $0x3e4] ss:$16 sps:$4 sm:$0xff]   ;;  %v4988_v7 = vld [vmem:[#allocation8 + $0x88] ss:$16 sps:$4 sm:$0xff]  }
 0x1cf   :  { %v2868_v47 = vmul.f32 0.7978846, %v2860_v15  ;;  %3711 = vmatpush2.bf16.msra.mxu0 %v4961_v10  ;;  %v2861_v18 = vadd.f32 %v2853_v17, %v5400_v0  ;;  %5125 = vtanh.f32 %v2865_v31  ;;  %3746 = vmatpush1.bf16.msra.mxu1 %v5045_v1  ;;  %v5050_v0 = vld [vmem:[#allocation8 + $0x204] ss:$16 sps:$4 sm:$0xff]   ;;  %v4993_v54 = vld [vmem:[#allocation8 + $0x6c] ss:$16 sps:$4 sm:$0xff]  }
 0x1d0   :  { %3712 = vmatprep.subr.bf16.mxu0 %v4966_v14  ;;  %3747 = vmatprep.subr.bf16.mxu1 %v5050_v0  ;;  %v5056_v8 = vld [vmem:[#allocation8 + $0x3c4] ss:$16 sps:$4 sm:$0xff]   ;;  %v5054_v9 = vld [vmem:[#allocation8 + $0x3c0] ss:$16 sps:$4 sm:$0xff]   ;;  %v4991_v10 = vld [vmem:[#allocation8 + $0x68] ss:$16 sps:$4 sm:$0xff]  }
 0x1d1   :  { %5127 = vtanh.f32 %v2868_v47  ;;  %v2869_v23 = vmul.f32 0.7978846, %v2861_v18  ;;  %v4996_v11 = vld [vmem:[#allocation8 + $0x4c] ss:$16 sps:$4 sm:$0xff]   ;;  %v5059_v14 = vld [vmem:[#allocation8 + $0x3a4] ss:$16 sps:$4 sm:$0xff]  }
 0x1d2   :  { %v4994_v31 = vld [vmem:[#allocation8 + $0x48] ss:$16 sps:$4 sm:$0xff]   ;;  %v4999_v15 = vld [vmem:[#allocation8 + $0x2c] ss:$16 sps:$4 sm:$0xff]   ;;  %v5060_v17 = vld [vmem:[#allocation8 + $0x380] ss:$16 sps:$4 sm:$0xff]  }
 0x1d3   :  { %3713 = vmatpush2.bf16.msra.mxu0 %v4964_v36  ;;  %5129 = vtanh.f32 %v2869_v23  ;;  %3748 = vmatpush1.bf16.msra.mxu1 %v5048_v2  ;;  %v5065_v47 = vld [vmem:[#allocation8 + $0x364] ss:$16 sps:$4 sm:$0xff]   ;;  %v4997_v36 = vld [vmem:[#allocation8 + $0x28] ss:$16 sps:$4 sm:$0xff]   ;;  %v5002_v18 = vld [vmem:[#allocation8 + $0xc] ss:$16 sps:$4 sm:$0xff]  }
 0x1d4   :  { %3714 = vmatprep.subr.bf16.mxu0 %v4969_v19  ;;  %3749 = vmatprep.subr.bf16.mxu1 %v5053_v5  ;;  %v5063_v19 = vld [vmem:[#allocation8 + $0x360] ss:$16 sps:$4 sm:$0xff]   ;;  %v5005_v23 = vld [vmem:[#allocation8 + $0x1ec] ss:$16 sps:$4 sm:$0xff]   ;;  %v5006_v32 = vld [vmem:[#allocation8 + $0x1c8] ss:$16 sps:$4 sm:$0xff]  }
 0x1d7   :  { %3715 = vmatpush2.bf16.msra.mxu0 %v4967_v24  ;;  %3750 = vmatpush2.bf16.msra.mxu1 %v5051_v6  ;;  %v5066_v24 = vld [vmem:[#allocation8 + $0x340] ss:$16 sps:$4 sm:$0xff]  }
 0x1d8   :  { %3716 = vmatprep.subr.bf16.mxu0 %v4972_v25  ;;  %3751 = vmatprep.subr.bf16.mxu1 %v5056_v8  ;;  %v5071_v25 = vld [vmem:[#allocation8 + $0x324] ss:$16 sps:$4 sm:$0xff]  }
 0x1da   :  { %v5124_v34 = vpop.eup %5123 }
 0x1db   :  { %3717 = vmatpush2.bf16.msra.mxu0 %v4970_v28  ;;  %v2880_v49 = vadd.f32 1.0, %v5124_v34  ;;  %3752 = vmatpush2.bf16.msra.mxu1 %v5054_v9  ;;  %v5069_v28 = vld [vmem:[#allocation8 + $0x320] ss:$16 sps:$4 sm:$0xff]  }
 0x1dc   :  { %3718 = vmatprep.subr.bf16.mxu0 %v4975_v29  ;;  %v5126_v37 = vpop.eup %5125  ;;  %3753 = vmatprep.subr.bf16.mxu1 %v5059_v14  ;;  %v5074_v29 = vld [vmem:[#allocation8 + $0x304] ss:$16 sps:$4 sm:$0xff]   ;;  %v5072_v34 = vld [vmem:[#allocation8 + $0x300] ss:$16 sps:$4 sm:$0xff]  }
 0x1dd   :  { %v2881_v41 = vadd.f32 1.0, %v5126_v37  ;;  %v2888_v48 = vmul.f32 %v2880_v49, %v2824_v45  ;;  %v5014_v37 = vld [vmem:[#allocation8 + $0x18c] ss:$16 sps:$4 sm:$0xff]   ;;  %v5021_v49 = vld [vmem:[#allocation8 + $0x128] ss:$16 sps:$4 sm:$0xff]  }
 0x1de   :  { %v5128_v39 = vpop.eup %5127 }
 0x1df   :  { %3719 = vmatpush2.bf16.msra.mxu0 %v4973_v33  ;;  %v2884_v53 = vadd.f32 1.0, %v5128_v39  ;;  %v2889_v58 = vmul.f32 %v2881_v41, %v2825_v50  ;;  %3754 = vmatpush2.bf16.msra.mxu1 %v5057_v13  ;;  %v5011_v33 = vld [vmem:[#allocation8 + $0x1ac] ss:$16 sps:$4 sm:$0xff]   ;;  %v5015_v41 = vld [vmem:[#allocation8 + $0x168] ss:$16 sps:$4 sm:$0xff]  }
 0x1e0   :  { %3720 = vmatprep.subr.bf16.mxu0 %v4978_v35  ;;  %v5130_v44 = vpop.eup %5129  ;;  %3755 = vmatprep.subr.bf16.mxu1 %v5062_v16  ;;  %v5009_v35 = vld [vmem:[#allocation8 + $0x1a8] ss:$16 sps:$4 sm:$0xff]   ;;  %v5077_v39 = vld [vmem:[#allocation8 + $0x2ec] ss:$16 sps:$4 sm:$0xff]  }
 0x1e1   :  { %v2885_v55 = vadd.f32 1.0, %v5130_v44  ;;  %v2892_v57 = vmul.f32 %v2884_v53, %v2828_v46  ;;  %v5017_v53 = vld [vmem:[#allocation8 + $0x16c] ss:$16 sps:$4 sm:$0xff]   ;;  %v5018_v44 = vld [vmem:[#allocation8 + $0x148] ss:$16 sps:$4 sm:$0xff]  }
 0x1e2   :  { %v5023_v46 = vld [vmem:[#allocation8 + $0x12c] ss:$16 sps:$4 sm:$0xff]  }
 0x1e3   :  { %3721 = vmatpush2.bf16.msra.mxu0 %v4976_v40  ;;  %v2893_v59 = vmul.f32 %v2885_v55, %v2829_v12  ;;  %v5414_v62 = vpack.c.bf16 %v2892_v57, %v2888_v48  ;;  %3756 = vmatpush2.bf16.msra.mxu1 %v5060_v17  ;;  %v5012_v40 = vld [vmem:[#allocation8 + $0x188] ss:$16 sps:$4 sm:$0xff]   ;;  %v5026_v50 = vld [vmem:[#allocation8 + $0x10c] ss:$16 sps:$4 sm:$0xff]  }
 0x1e4   :  { %3776 = vmatprep.subr.bf16.mxu0 %v4981_v42  ;;  %3757 = vmatprep.subr.bf16.mxu1 %v5065_v47  ;;  %v5020_v42 = vld [vmem:[#allocation8 + $0x14c] ss:$16 sps:$4 sm:$0xff]   ;;  %v5024_v12 = vld [vmem:[#allocation8 + $0x108] ss:$16 sps:$4 sm:$0xff]  }
 0x1e5   :  { %v2897_v21 = vpack.c.bf16 %v2893_v59, %v2889_v58 }
 0x1e7   :  { %3722 = vmatprep.mubr.bf16.mxu0 %v2897_v21  ;;  %3758 = vmatpush2.bf16.msra.mxu1 %v5063_v19  ;;  %v2600_v55 = vpop.f32.mrf.mxu1 }
 0x1e8   :  { %3723 = vmatmul.mubr.bf16.vlgmr.msra.gmra.mxu0 %v5414_v62  ;;  %3759 = vmatprep.subr.bf16.mxu1 %v5068_v20 }
 0x1e9   :  { %3777 = vmatpush1.bf16.msra.mxu0 %v4979_v61  ;;  %3808 = vmatprep.mubr.bf16.mxu0 %v2897_v21  ;;  %v2602_v57 = vpop.f32.mrf.mxu1 }
 0x1ea   :  { %3778 = vmatprep.subr.bf16.mxu0 %v4984_v63  ;;  %v494_v63 = vsub.s32 2, %v5374_v51 }
 0x1eb   :  { %3760 = vmatpush2.bf16.msra.mxu1 %v5066_v24  ;;  %v2604_v59 = vpop.f32.mrf.mxu1 }
 0x1ec   :  { %3761 = vmatprep.subr.bf16.mxu1 %v5071_v25 }
 0x1ed   :  { %3779 = vmatpush1.bf16.msra.mxu0 %v4982_v38  ;;  %v2606_v21 = vpop.f32.mrf.mxu1  ;;  %v498_v38 = vsub.s32 3, %v5374_v51 }
 0x1ee   :  { %3780 = vmatprep.subr.bf16.mxu0 %v4987_v43  ;;  %v495_v43 = vrot.slane %v5377_v60, %v494_v63 }
 0x1ef   :  { %3762 = vmatpush2.bf16.msra.mxu1 %v5069_v28  ;;  %v499_v2 = vrot.slane %v5377_v60, %v498_v38 }
 0x1f0   :  { %3763 = vmatprep.subr.bf16.mxu1 %v5074_v29 }
 0x1f1   :  { %3781 = vmatpush1.bf16.msra.mxu0 %v4985_v3  ;;  %v2601_v3 = vadd.f32 %v2600_v55, %v495_v43  ;;  %v2603_v6 = vadd.f32 %v2602_v57, %v499_v2  ;;  %v2607_v14 = vadd.f32 %v2606_v21, %v499_v2 }
 0x1f2   :  { %3782 = vmatprep.subr.bf16.mxu0 %v4990_v4 }
 0x1f3   :  { %3764 = vmatpush2.bf16.msra.mxu1 %v5072_v34 }
 0x1f4   :  { %3819 = vmatprep.subr.bf16.mxu1 %v5077_v39 }
 0x1f5   :  { %3783 = vmatpush1.bf16.msra.mxu0 %v4988_v7 }
 0x1f6   :  { %3784 = vmatprep.subr.bf16.mxu0 %v4993_v54  ;;  %v2605_v54 = vadd.f32 %v2604_v59, %v495_v43 }
 0x1f9   :  { %3785 = vmatpush1.bf16.msra.mxu0 %v4991_v10 }
 0x1fa   :  { %3786 = vmatprep.subr.bf16.mxu0 %v4996_v11 }
 0x1fd   :  { %3787 = vmatpush1.bf16.msra.mxu0 %v4994_v31 }
 0x1fe   :  { %3788 = vmatprep.subr.bf16.mxu0 %v4999_v15  ;;  %v2643_v45 = vpop.f32.mrf.mxu0 }
 0x1ff   :  { %v2644_v7 = vadd.f32 %v2643_v45, %v2601_v3 }
 0x200   :  { %v2645_v58 = vpop.f32.mrf.mxu0 }
 0x201   :  { %3789 = vmatpush1.bf16.msra.mxu0 %v4997_v36  ;;  %v2646_v8 = vadd.f32 %v2645_v58, %v2603_v6 }
 0x202   :  { %3790 = vmatprep.subr.bf16.mxu0 %v5002_v18  ;;  %v2647_v48 = vpop.f32.mrf.mxu0 }
 0x203   :  { %v2648_v13 = vadd.f32 %v2647_v48, %v2605_v54 }
 0x204   :  { %v2649_v61 = vpop.f32.mrf.mxu0 }
 0x205   :  { %3791 = vmatpush1.bf16.msra.mxu0 %v5000_v22  ;;  %v2650_v47 = vadd.f32 %v2649_v61, %v2607_v14 }
 0x206   :  { %3792 = vmatprep.subr.bf16.mxu0 %v5005_v23 }
 0x209   :  { %3793 = vmatpush2.bf16.msra.mxu0 %v5003_v26 }
 0x20a   :  { %3794 = vmatprep.subr.bf16.mxu0 %v5008_v27 }
 0x20d   :  { %3795 = vmatpush2.bf16.msra.mxu0 %v5006_v32 }
 0x20e   :  { %3796 = vmatprep.subr.bf16.mxu0 %v5011_v33 }
 0x211   :  { %3797 = vmatpush2.bf16.msra.mxu0 %v5009_v35 }
 0x212   :  { %3798 = vmatprep.subr.bf16.mxu0 %v5014_v37 }
 0x215   :  { %3799 = vmatpush2.bf16.msra.mxu0 %v5012_v40 }
 0x216   :  { %3800 = vmatprep.subr.bf16.mxu0 %v5017_v53 }
 0x219   :  { %3801 = vmatpush2.bf16.msra.mxu0 %v5015_v41 }
 0x21a   :  { %3802 = vmatprep.subr.bf16.mxu0 %v5020_v42 }
 0x21d   :  { %3803 = vmatpush2.bf16.msra.mxu0 %v5018_v44 }
 0x21e   :  { %3804 = vmatprep.subr.bf16.mxu0 %v5023_v46 }
 0x221   :  { %3805 = vmatpush2.bf16.msra.mxu0 %v5021_v49 }
 0x222   :  { %3806 = vmatprep.subr.bf16.mxu0 %v5026_v50 }
 0x225   :  { %3807 = vmatpush2.bf16.msra.mxu0 %v5024_v12 }
 0x227   :  { %v2686_v56 = vpop.f32.mrf.mxu1 }
 0x228   :  { %3809 = vmatmul.mubr.bf16.vlgmr.msra.gmra.mxu0 %v5414_v62  ;;  %v2687_v9 = vadd.f32 %v2686_v56, %v2644_v7 }
 0x229   :  { %v2688_v0 = vpop.f32.mrf.mxu1 }
 0x22a   :  { %v2689_v31 = vadd.f32 %v2688_v0, %v2646_v8 }
 0x22b   :  { %v2690_v4 = vpop.f32.mrf.mxu1 }
 0x22c   :  { %v2691_v36 = vadd.f32 %v2690_v4, %v2648_v13 }
 0x22d   :  { %v2692_v10 = vpop.f32.mrf.mxu1 }
 0x22e   :  { %v2693_v22 = vadd.f32 %v2692_v10, %v2650_v47  ;;  %v5080_v47 = vld [vmem:[#allocation8 + $0x2cc] ss:$16 sps:$4 sm:$0xff]  }
 0x23e   :  { %v2729_v1 = vpop.f32.mrf.mxu0 }
 0x23f   :  { %v2730_v15 = vadd.f32 %v2729_v1, %v2687_v9 }
 0x240   :  { %v2731_v62 = vpop.f32.mrf.mxu0 }
 0x241   :  { %v2732_v18 = vadd.f32 %v2731_v62, %v2689_v31 }
 0x242   :  { %v2733_v5 = vpop.f32.mrf.mxu0 }
 0x243   :  { %v2734_v23 = vadd.f32 %v2733_v5, %v2691_v36  ;;  %v5078_v36 = vld [vmem:[#allocation8 + $0x2c8] ss:$16 sps:$4 sm:$0xff]  }
 0x244   :  { %v2735_v11 = vpop.f32.mrf.mxu0 }
 0x245   :  { %v2736_v27 = vadd.f32 %v2735_v11, %v2693_v22  ;;  %v5089_v22 = vld [vmem:[#allocation8 + $0x26c] ss:$16 sps:$4 sm:$0xff]  }
 0x266   :  { %v2815_v17 = vpop.f32.mrf.mxu0 }
 0x267   :  { %v2772_v16 = vpop.f32.mrf.mxu1 }
 0x268   :  { %v2773_v60 = vadd.f32 %v2772_v16, %v2730_v15  ;;  %v2817_v20 = vpop.f32.mrf.mxu0  ;;  %v5075_v16 = vld [vmem:[#allocation8 + $0x2e8] ss:$16 sps:$4 sm:$0xff]  }
 0x269   :  { %v2774_v19 = vpop.f32.mrf.mxu1 }
 0x26a   :  { %v2816_v24 = vadd.f32 %v2815_v17, %v2773_v60  ;;  %v2775_v25 = vadd.f32 %v2774_v19, %v2732_v18  ;;  %v2819_v33 = vpop.f32.mrf.mxu0  ;;  %v5083_v18 = vld [vmem:[#allocation8 + $0x2ac] ss:$16 sps:$4 sm:$0xff]   ;;  %v5081_v60 = vld [vmem:[#allocation8 + $0x2a8] ss:$16 sps:$4 sm:$0xff]  }
 0x26b   :  { %v2776_v26 = vpop.f32.mrf.mxu1  ;;  %v5086_v19 = vld [vmem:[#allocation8 + $0x28c] ss:$16 sps:$4 sm:$0xff]  }
 0x26c   :  { %v2834_v28 = vmul.f32 %v2816_v24, %v2816_v24  ;;  %v2818_v29 = vadd.f32 %v2817_v20, %v2775_v25  ;;  %v2777_v32 = vadd.f32 %v2776_v26, %v2734_v23  ;;  %v2821_v44 = vpop.f32.mrf.mxu0  ;;  %v2826_v10 = vmul.f32 0.5, %v2816_v24  ;;  %v5084_v20 = vld [vmem:[#allocation8 + $0x288] ss:$16 sps:$4 sm:$0xff]   ;;  %v5095_v26 = vld [vmem:[#allocation8 + $0x22c] ss:$16 sps:$4 sm:$0xff]  }
 0x26d   :  { %v2778_v34 = vpop.f32.mrf.mxu1  ;;  %v5087_v23 = vld [vmem:[#allocation8 + $0x268] ss:$16 sps:$4 sm:$0xff]  }
 0x26e   :  { %v2842_v35 = vmul.f32 %v2834_v28, %v2816_v24  ;;  %v2835_v37 = vmul.f32 %v2818_v29, %v2818_v29  ;;  %v2820_v39 = vadd.f32 %v2819_v33, %v2777_v32  ;;  %v2779_v40 = vadd.f32 %v2778_v34, %v2736_v27  ;;  %v5090_v25 = vld [vmem:[#allocation8 + $0x248] ss:$16 sps:$4 sm:$0xff]   ;;  %v5098_v28 = vld [vmem:[#allocation8 + $0x20c] ss:$16 sps:$4 sm:$0xff]  }
 0x26f   :  { %v2827_v54 = vmul.f32 0.5, %v2818_v29  ;;  %v5093_v27 = vld [vmem:[#allocation8 + $0x228] ss:$16 sps:$4 sm:$0xff]   ;;  %v5101_v32 = vld [vmem:[#allocation8 + $0x3ec] ss:$16 sps:$4 sm:$0xff]  }
 0x270   :  { %v2850_v53 = vmul.f32 0.044715, %v2842_v35  ;;  %v2843_v41 = vmul.f32 %v2835_v37, %v2818_v29  ;;  %v2838_v42 = vmul.f32 %v2820_v39, %v2820_v39  ;;  %v2822_v46 = vadd.f32 %v2821_v44, %v2779_v40  ;;  %v5099_v33 = vld [vmem:[#allocation8 + $0x3e8] ss:$16 sps:$4 sm:$0xff]   ;;  %v5104_v34 = vld [vmem:[#allocation8 + $0x3cc] ss:$16 sps:$4 sm:$0xff]  }
 0x271   :  { %v2830_v6 = vmul.f32 0.5, %v2820_v39  ;;  %v5102_v35 = vld [vmem:[#allocation8 + $0x3c8] ss:$16 sps:$4 sm:$0xff]   ;;  %v5107_v37 = vld [vmem:[#allocation8 + $0x3ac] ss:$16 sps:$4 sm:$0xff]  }
 0x272   :  { %v2858_v49 = vadd.f32 %v2850_v53, %v2816_v24  ;;  %v2851_v50 = vmul.f32 0.044715, %v2843_v41  ;;  %v2846_v12 = vmul.f32 %v2838_v42, %v2820_v39  ;;  %v2839_v55 = vmul.f32 %v2822_v46, %v2822_v46  ;;  %v5092_v24 = vld [vmem:[#allocation8 + $0x24c] ss:$16 sps:$4 sm:$0xff]   ;;  %v5108_v53 = vld [vmem:[#allocation8 + $0x388] ss:$16 sps:$4 sm:$0xff]  }
 0x273   :  { %v2831_v8 = vmul.f32 0.5, %v2822_v46  ;;  %v5110_v40 = vld [vmem:[#allocation8 + $0x38c] ss:$16 sps:$4 sm:$0xff]   ;;  %v5111_v42 = vld [vmem:[#allocation8 + $0x368] ss:$16 sps:$4 sm:$0xff]  }
 0x274   :  { %v2866_v45 = vmul.f32 0.7978846, %v2858_v49  ;;  %v2859_v57 = vadd.f32 %v2851_v50, %v2818_v29  ;;  %v2854_v58 = vmul.f32 0.044715, %v2846_v12  ;;  %v2847_v59 = vmul.f32 %v2839_v55, %v2822_v46  ;;  %v5096_v29 = vld [vmem:[#allocation8 + $0x208] ss:$16 sps:$4 sm:$0xff]  }
 0x275   :  { %v5113_v41 = vld [vmem:[#allocation8 + $0x36c] ss:$16 sps:$4 sm:$0xff]   ;;  %v5117_v50 = vld [vmem:[#allocation8 + $0x328] ss:$16 sps:$4 sm:$0xff]  }
 0x276   :  { %v2867_v48 = vmul.f32 0.7978846, %v2859_v57  ;;  %v2862_v21 = vadd.f32 %v2854_v58, %v2820_v39  ;;  %v2855_v61 = vmul.f32 0.044715, %v2847_v59  ;;  %5131 = vtanh.f32 %v2866_v45  ;;  %v5105_v39 = vld [vmem:[#allocation8 + $0x3a8] ss:$16 sps:$4 sm:$0xff]  }
 0x277   :  { %v5116_v44 = vld [vmem:[#allocation8 + $0x34c] ss:$16 sps:$4 sm:$0xff]   ;;  %v5120_v55 = vld [vmem:[#allocation8 + $0x308] ss:$16 sps:$4 sm:$0xff]   ;;  %v3028_v57 = vld [vmem:[#allocation10] sm:$0xf] }
 0x278   :  { %v2870_v56 = vmul.f32 0.7978846, %v2862_v21  ;;  %5133 = vtanh.f32 %v2867_v48  ;;  %v2863_v1 = vadd.f32 %v2855_v61, %v2822_v46  ;;  %v5114_v46 = vld [vmem:[#allocation8 + $0x348] ss:$16 sps:$4 sm:$0xff]   ;;  %v5119_v49 = vld [vmem:[#allocation8 + $0x32c] ss:$16 sps:$4 sm:$0xff]   ;;  %v3033_v59 = vrot.slane %v3028_v57, %v486_v30 }
 0x279   :  { %v5122_v12 = vld [vmem:[#allocation8 + $0x30c] ss:$16 sps:$4 sm:$0xff]   ;;  %v3037_v48 = vrot.slane %v3028_v57, %v490_v52 }
 0x27a   :  { %5135 = vtanh.f32 %v2870_v56  ;;  %v2871_v43 = vmul.f32 0.7978846, %v2863_v1 }
 0x27c   :  { %5137 = vtanh.f32 %v2871_v43 }
 0x283   :  { %v5132_v0 = vpop.eup %5131 }
 0x284   :  { %v2882_v7 = vadd.f32 1.0, %v5132_v0 }
 0x285   :  { %v5134_v62 = vpop.eup %5133 }
 0x286   :  { %v2883_v4 = vadd.f32 1.0, %v5134_v62  ;;  %v2890_v31 = vmul.f32 %v2882_v7, %v2826_v10 }
 0x287   :  { %v5136_v2 = vpop.eup %5135 }
 0x288   :  { %v2886_v3 = vadd.f32 1.0, %v5136_v2  ;;  %v2891_v14 = vmul.f32 %v2883_v4, %v2827_v54 }
 0x289   :  { %v5138_v5 = vpop.eup %5137 }
 0x28a   :  { %v2887_v9 = vadd.f32 1.0, %v5138_v5  ;;  %v2894_v11 = vmul.f32 %v2886_v3, %v2830_v6 }
 0x28c   :  { %v2895_v13 = vmul.f32 %v2887_v9, %v2831_v8  ;;  %v5426_v17 = vpack.c.bf16 %v2894_v11, %v2890_v31  ;;  %v3041_v8 = vrot.slane %v3028_v57, %v494_v63  ;;  %v3045_v9 = vrot.slane %v3028_v57, %v498_v38 }
 0x28e   :  { %v2899_v15 = vpack.c.bf16 %v2895_v13, %v2891_v14 }
 0x290   :  { %3765 = vmatprep.mubr.bf16.mxu1 %v2899_v15 }
 0x291   :  { %3766 = vmatmul.mubr.bf16.vlgmr.msra.gmra.mxu1 %v5426_v17 }
 0x292   :  { %3820 = vmatpush1.bf16.msra.mxu1 %v5075_v16  ;;  %3851 = vmatprep.mubr.bf16.mxu1 %v2899_v15 }
 0x293   :  { %3821 = vmatprep.subr.bf16.mxu1 %v5080_v47 }
 0x296   :  { %3822 = vmatpush1.bf16.msra.mxu1 %v5078_v36 }
 0x297   :  { %3823 = vmatprep.subr.bf16.mxu1 %v5083_v18 }
 0x29a   :  { %3824 = vmatpush1.bf16.msra.mxu1 %v5081_v60 }
 0x29b   :  { %3825 = vmatprep.subr.bf16.mxu1 %v5086_v19 }
 0x29e   :  { %3826 = vmatpush1.bf16.msra.mxu1 %v5084_v20 }
 0x29f   :  { %3827 = vmatprep.subr.bf16.mxu1 %v5089_v22 }
 0x2a2   :  { %3828 = vmatpush1.bf16.msra.mxu1 %v5087_v23 }
 0x2a3   :  { %3829 = vmatprep.subr.bf16.mxu1 %v5092_v24 }
 0x2a6   :  { %3830 = vmatpush1.bf16.msra.mxu1 %v5090_v25 }
 0x2a7   :  { %3831 = vmatprep.subr.bf16.mxu1 %v5095_v26 }
 0x2a8   :  { %v3724_v45 = vpop.f32.mrf.mxu0 }
 0x2a9   :  { %v3725_v61 = vadd.f32 %v3724_v45, %v3033_v59 }
 0x2aa   :  { %3832 = vmatpush1.bf16.msra.mxu1 %v5093_v27  ;;  %v3726_v58 = vpop.f32.mrf.mxu0 }
 0x2ab   :  { %3833 = vmatprep.subr.bf16.mxu1 %v5098_v28  ;;  %v3727_v1 = vadd.f32 %v3726_v58, %v3037_v48 }
 0x2ac   :  { %v3728_v21 = vpop.f32.mrf.mxu0 }
 0x2ad   :  { %v3729_v2 = vadd.f32 %v3728_v21, %v3033_v59 }
 0x2ae   :  { %3834 = vmatpush1.bf16.msra.mxu1 %v5096_v29  ;;  %v3730_v0 = vpop.f32.mrf.mxu0 }
 0x2af   :  { %3835 = vmatprep.subr.bf16.mxu1 %v5101_v32  ;;  %v3731_v5 = vadd.f32 %v3730_v0, %v3037_v48 }
 0x2b2   :  { %3836 = vmatpush2.bf16.msra.mxu1 %v5099_v33 }
 0x2b3   :  { %3837 = vmatprep.subr.bf16.mxu1 %v5104_v34 }
 0x2b6   :  { %3838 = vmatpush2.bf16.msra.mxu1 %v5102_v35 }
 0x2b7   :  { %3839 = vmatprep.subr.bf16.mxu1 %v5107_v37 }
 0x2ba   :  { %3840 = vmatpush2.bf16.msra.mxu1 %v5105_v39 }
 0x2bb   :  { %3841 = vmatprep.subr.bf16.mxu1 %v5110_v40 }
 0x2be   :  { %3842 = vmatpush2.bf16.msra.mxu1 %v5108_v53 }
 0x2bf   :  { %3843 = vmatprep.subr.bf16.mxu1 %v5113_v41 }
 0x2c2   :  { %3844 = vmatpush2.bf16.msra.mxu1 %v5111_v42 }
 0x2c3   :  { %3845 = vmatprep.subr.bf16.mxu1 %v5116_v44 }
 0x2c6   :  { %3846 = vmatpush2.bf16.msra.mxu1 %v5114_v46 }
 0x2c7   :  { %3847 = vmatprep.subr.bf16.mxu1 %v5119_v49 }
 0x2ca   :  { %3848 = vmatpush2.bf16.msra.mxu1 %v5117_v50 }
 0x2cb   :  { %3849 = vmatprep.subr.bf16.mxu1 %v5122_v12 }
 0x2ce   :  { %3850 = vmatpush2.bf16.msra.mxu1 %v5120_v55 }
 0x2d1   :  { %3852 = vmatmul.mubr.bf16.vlgmr.msra.gmra.mxu1 %v5426_v17 }
 0x2e8   :  { %v3810_v54 = vpop.f32.mrf.mxu0 }
 0x2e9   :  { %v3811_v11 = vadd.f32 %v3810_v54, %v3041_v8 }
 0x2ea   :  { %v3812_v52 = vpop.f32.mrf.mxu0 }
 0x2eb   :  { %v3813_v13 = vadd.f32 %v3812_v52, %v3045_v9 }
 0x2ec   :  { %v3814_v10 = vpop.f32.mrf.mxu0 }
 0x2ed   :  { %v3815_v17 = vadd.f32 %v3814_v10, %v3041_v8 }
 0x2ee   :  { %v3816_v15 = vpop.f32.mrf.mxu0 }
 0x2ef   :  { %v3817_v18 = vadd.f32 %v3816_v15, %v3045_v9 }
 0x351   :  { %v3767_v56 = vpop.f32.mrf.mxu1 }
 0x352   :  { %v3768_v43 = vadd.f32 %v3767_v56, %v3725_v61 }
 0x353   :  { %v3769_v62 = vpop.f32.mrf.mxu1 }
 0x354   :  { %3862 = vst [vmem:[#allocation11] sm:$0xff] %v3768_v43  ;;  %v3770_v3 = vadd.f32 %v3769_v62, %v3727_v1 }
 0x355   :  { %v3771_v4 = vpop.f32.mrf.mxu1 }
 0x356   :  { %3863 = vst [vmem:[#allocation11 + $0x8] sm:$0xff] %v3770_v3  ;;  %v3772_v6 = vadd.f32 %v3771_v4, %v3729_v2 }
 0x357   :  { %v3773_v7 = vpop.f32.mrf.mxu1 }
 0x358   :  { %3866 = vst [vmem:[#allocation11 + $0x20] sm:$0xff] %v3772_v6  ;;  %v3774_v30 = vadd.f32 %v3773_v7, %v3731_v5 }
 0x35a   :  { %3867 = vst [vmem:[#allocation11 + $0x28] sm:$0xff] %v3774_v30 }
 0x391   :  { %v3853_v14 = vpop.f32.mrf.mxu1 }
 0x392   :  { %v3854_v31 = vadd.f32 %v3853_v14, %v3811_v11 }
 0x393   :  { %v3855_v16 = vpop.f32.mrf.mxu1 }
 0x394   :  { %3864 = vst [vmem:[#allocation11 + $0x10] sm:$0xff] %v3854_v31  ;;  %v3856_v47 = vadd.f32 %v3855_v16, %v3813_v13 }
 0x395   :  { %v3857_v36 = vpop.f32.mrf.mxu1 }
 0x396   :  { %3865 = vst [vmem:[#allocation11 + $0x18] sm:$0xff] %v3856_v47  ;;  %v3858_v60 = vadd.f32 %v3857_v36, %v3815_v17 }
 0x397   :  { %v3859_v63 = vpop.f32.mrf.mxu1 }
 0x398   :  { %3868 = vst [vmem:[#allocation11 + $0x30] sm:$0xff] %v3858_v60  ;;  %v3860_v51 = vadd.f32 %v3859_v63, %v3817_v18 }
 0x39a   :  { %3869 = vst [vmem:[#allocation11 + $0x38] sm:$0xff] %v3860_v51 }
 0x39b   :  { %5250 = shalt.err (!%p5247_p1)
}
 0x39c   :  { %s5277_s20 = smov 512   ;;  %s5278_s21 = smov 32  }
 0x39d   :  { %3881 = dma.vmem_to_hbm [thread:$0]  %s3876_s4, 1024, %s5446_s5, [#allocation4], %s5277_s20, %s5277_s20, %s5278_s21  }
 0x39e   :  { %5265 = dma.done.wait [#allocation4], 1024  }
 0x39f   :  { %5266 = vsyncadd [#allocation4], 4294966272 }
 0x3a0   :  { %3885 = vsyncpa [#allocation3], 1 }
 0x3a1   :  { %3886 = vsyncpa [#allocation6], 1 }
 0x3a2   :  { %3887 = vsyncpa [#allocation9], 1 }
 0x3a3   :  { %3888 = vsyncpa [#allocation4], 1 }

</bundles_post_ra>
